<compile_context>
chip_gen: v7x
topology: tpu7x:2x2x1
jax: 0.10.0
libtpu: 0.0.40
codegen_flags: <defaults>
</compile_context>

<pallas_src>
import jax
import jax.numpy as jnp
import numpy as np
from jax.experimental import pallas as pl
from jax.experimental.pallas import tpu as pltpu

_MXU_DTYPE = jnp.bfloat16     # MXU matmul input dtype (f32 accumulation)
_ACT_DTYPE = jnp.bfloat16     # HBM dtype of intermediate activations
_BN_EPS = 1e-5


# ---------------------------------------------------------------------------
# Band-matrix builders (run in the XLA wrapper, once per jit trace)
# ---------------------------------------------------------------------------
def _band_up(w_pair, wdim):
    """w_pair: (2, Cin, Cout) width taps of the 2x2 conv for one output-row
    parity.  Returns (wdim*Cin, 2*wdim*Cout): maps a lane-merged low-res input
    row to a lane-merged upsampled+conv'd output row.  'same' (0,1) width pad
    is encoded by dropping the out-of-range tap of the last output column."""
    cin, cout = w_pair.shape[1], w_pair.shape[2]
    band = jnp.zeros((wdim, cin, 2 * wdim, cout), jnp.float32)
    for ks in range(2):
        s = np.arange(2 * wdim)
        valid = (s + ks) < 2 * wdim
        s_v = s[valid]
        w_v = (s_v + ks) // 2            # nearest-x2 upsample folded in here
        band = band.at[w_v, :, s_v, :].add(w_pair[ks][None, :, :])
    return band.reshape(wdim * cin, 2 * wdim * cout)


def _band_conv3(w_taps, wdim):
    """w_taps: (3, Cin, Cout) kw taps of a 3x3 conv for one kh.
    Returns (wdim*Cin, wdim*Cout) band matrix ('same' width pad encoded)."""
    cin, cout = w_taps.shape[1], w_taps.shape[2]
    band = jnp.zeros((wdim, cin, wdim, cout), jnp.float32)
    for kw in range(3):
        s = np.arange(wdim)
        w_in = s + kw - 1
        valid = (w_in >= 0) & (w_in < wdim)
        band = band.at[w_in[valid], :, s[valid], :].add(w_taps[kw][None, :, :])
    return band.reshape(wdim * cin, wdim * cout)


def _tile_c(vec, reps):
    """Tile a per-channel (C,) vector across `reps` width positions -> (1, reps*C)."""
    return jnp.tile(vec.reshape(1, -1), (1, reps)).astype(jnp.float32)


def _reduce_stats(st, cout):
    """st: (N, 2, W*C) lane-dense [sum; sumsq] partials -> (2, C) global sums."""
    n = st.shape[0]
    return st.reshape(n, 2, -1, cout).sum(axis=(0, 2))


def _bn_affine(sums, gamma, beta, count):
    """Training-mode BN (biased variance) folded into a per-channel affine."""
    mean = sums[0] / count
    var = jnp.maximum(sums[1] / count - mean * mean, 0.0)
    scale = gamma.reshape(-1) * jax.lax.rsqrt(var + _BN_EPS)
    shift = beta.reshape(-1) - mean * scale
    return jnp.stack([scale, shift], axis=0).astype(jnp.float32)   # (2, C)


# ---------------------------------------------------------------------------
# Kernels
# ---------------------------------------------------------------------------
def _up_kernel(x_ref, a_ref, bias_ref, out_ref, stat_ref):
    """Nearest-x2 upsample fused into the 2x2 'same' conv via banded row
    matmul; + bias + ReLU + single-pass BN partials; lane-dense bf16 store."""
    h = x_ref.shape[0]
    l = a_ref.shape[1] // 3                   # lane-merged output row width (2W*Cout)
    f32 = jnp.float32
    zrow = jnp.zeros((1, x_ref.shape[1]), _MXU_DTYPE)
    xp = jnp.concatenate([x_ref[...].astype(_MXU_DTYPE), zrow], axis=0)   # bottom pad row
    q = jnp.dot(xp, a_ref[...], preferred_element_type=f32)              # (h+1, 3l)
    even = q[0:h, 0:l]                                    # output rows 2i
    odd = q[0:h, l:2 * l] + q[1:h + 1, 2 * l:3 * l]       # output rows 2i+1
    y = jnp.maximum(jnp.concatenate([even, odd], axis=-1) + bias_ref[...], 0.0)
    stat_ref[...] = jnp.concatenate(
        [jnp.sum(y, axis=0, keepdims=True),
         jnp.sum(y * y, axis=0, keepdims=True)], axis=0)
    out_ref[...] = y.astype(out_ref.dtype)


def _conv1_kernel(skip_ref, u_ref, aff_ref, bs_ref, bu_ref, bias_ref,
                  out_ref, stat_ref):
    """BN(up) at load (single f32->bf16 cast), torch.cat([skip, up]) eliminated
    by Cin-split weights, 3x3 'same' conv as 2 banded matmuls, ReLU, BN partials."""
    hh = skip_ref.shape[0]
    l = out_ref.shape[1]
    f32 = jnp.float32
    zs = jnp.zeros((1, skip_ref.shape[1]), _MXU_DTYPE)
    zu = jnp.zeros((1, u_ref.shape[1]), _MXU_DTYPE)
    skip_p = jnp.concatenate([zs, skip_ref[...].astype(_MXU_DTYPE), zs], axis=0)
    u_bn = (u_ref[...].astype(f32) * aff_ref[0:1, :]
            + aff_ref[1:2, :]).astype(_MXU_DTYPE)
    u_p = jnp.concatenate([zu, u_bn, zu], axis=0)
    q = (jnp.dot(skip_p, bs_ref[...], preferred_element_type=f32)
         + jnp.dot(u_p, bu_ref[...], preferred_element_type=f32))        # (hh+2, 3l)
    acc = q[0:hh, 0:l] + q[1:hh + 1, l:2 * l] + q[2:hh + 2, 2 * l:3 * l]
    y = jnp.maximum(acc + bias_ref[...], 0.0)
    stat_ref[...] = jnp.concatenate(
        [jnp.sum(y, axis=0, keepdims=True),
         jnp.sum(y * y, axis=0, keepdims=True)], axis=0)
    out_ref[...] = y.astype(out_ref.dtype)


def _conv2_kernel(h_ref, aff_ref, b_ref, bias_ref, out_ref, stat_ref):
    """BN(h1) at load + 3x3 'same' conv (one banded matmul) + ReLU + BN partials."""
    hh = h_ref.shape[0]
    l = out_ref.shape[1]
    f32 = jnp.float32
    z = jnp.zeros((1, h_ref.shape[1]), _MXU_DTYPE)
    x_bn = (h_ref[...].astype(f32) * aff_ref[0:1, :]
            + aff_ref[1:2, :]).astype(_MXU_DTYPE)
    xp = jnp.concatenate([z, x_bn, z], axis=0)
    q = jnp.dot(xp, b_ref[...], preferred_element_type=f32)              # (hh+2, 3l)
    acc = q[0:hh, 0:l] + q[1:hh + 1, l:2 * l] + q[2:hh + 2, 2 * l:3 * l]
    y = jnp.maximum(acc + bias_ref[...], 0.0)
    stat_ref[...] = jnp.concatenate(
        [jnp.sum(y, axis=0, keepdims=True),
         jnp.sum(y * y, axis=0, keepdims=True)], axis=0)
    out_ref[...] = y.astype(out_ref.dtype)


def _bn_apply_kernel(x_ref, aff_ref, o_ref):
    """Final BN affine: full-lane elementwise pass (bf16 in, f32 out).
    (input_output_aliases not used: input is bf16, output f32.)"""
    o_ref[...] = x_ref[...].astype(jnp.float32) * aff_ref[0:1, :] + aff_ref[1:2, :]


# ---------------------------------------------------------------------------
# BlockSpec helpers and pallas_call wrappers
# ---------------------------------------------------------------------------
def _batch_spec(tail):
    tail = tuple(tail)
    zeros = (0,) * len(tail)
    return pl.BlockSpec((None,) + tail, lambda n: (n,) + zeros)


def _full_spec(shape):
    shape = tuple(shape)
    zeros = (0,) * len(shape)
    return pl.BlockSpec(shape, lambda n: zeros)


def _compiler_params(*blocks):
    """Derive the per-call VMEM budget from actual block bytes x double-buffering."""
    total = sum(int(np.prod(s)) * jnp.dtype(d).itemsize for s, d in blocks)
    limit = int(min(max(2 * total + (4 << 20), 8 << 20), 96 << 20))
    return pltpu.CompilerParams(
        dimension_semantics=("parallel",),       # batch axis -> both TCs on v7x
        vmem_limit_bytes=limit)


def _up_call(x_m, a_up, bias_t):
    n, h, k = x_m.shape
    l = a_up.shape[1] // 3
    blocks = (((h, k), x_m.dtype), (a_up.shape, a_up.dtype),
              (bias_t.shape, bias_t.dtype),
              ((h, 2 * l), _ACT_DTYPE), ((2, 2 * l), jnp.float32))
    return pl.pallas_call(
        _up_kernel,
        grid=(n,),
        in_specs=[_batch_spec((h, k)), _full_spec(a_up.shape),
                  _full_spec(bias_t.shape)],
        out_specs=(_batch_spec((h, 2 * l)), _batch_spec((2, 2 * l))),
        out_shape=(jax.ShapeDtypeStruct((n, h, 2 * l), _ACT_DTYPE),
                   jax.ShapeDtypeStruct((n, 2, 2 * l), jnp.float32)),
        compiler_params=_compiler_params(*blocks),
    )(x_m, a_up, bias_t)


def _conv1_call(skip_m, u_m, aff_t, bs, bu, bias_t):
    n, hh, ks = skip_m.shape
    ku = u_m.shape[-1]
    l = bs.shape[1] // 3
    blocks = (((hh, ks), skip_m.dtype), ((hh, ku), u_m.dtype),
              (aff_t.shape, aff_t.dtype), (bs.shape, bs.dtype),
              (bu.shape, bu.dtype), (bias_t.shape, bias_t.dtype),
              ((hh, l), _ACT_DTYPE), ((2, l), jnp.float32))
    return pl.pallas_call(
        _conv1_kernel,
        grid=(n,),
        in_specs=[_batch_spec((hh, ks)), _batch_spec((hh, ku)),
                  _full_spec(aff_t.shape), _full_spec(bs.shape),
                  _full_spec(bu.shape), _full_spec(bias_t.shape)],
        out_specs=(_batch_spec((hh, l)), _batch_spec((2, l))),
        out_shape=(jax.ShapeDtypeStruct((n, hh, l), _ACT_DTYPE),
                   jax.ShapeDtypeStruct((n, 2, l), jnp.float32)),
        compiler_params=_compiler_params(*blocks),
    )(skip_m, u_m, aff_t, bs, bu, bias_t)


def _conv2_call(h_m, aff_t, b, bias_t):
    n, hh, k = h_m.shape
    l = b.shape[1] // 3
    blocks = (((hh, k), h_m.dtype), (aff_t.shape, aff_t.dtype),
              (b.shape, b.dtype), (bias_t.shape, bias_t.dtype),
              ((hh, l), _ACT_DTYPE), ((2, l), jnp.float32))
    return pl.pallas_call(
        _conv2_kernel,
        grid=(n,),
        in_specs=[_batch_spec((hh, k)), _full_spec(aff_t.shape),
                  _full_spec(b.shape), _full_spec(bias_t.shape)],
        out_specs=(_batch_spec((hh, l)), _batch_spec((2, l))),
        out_shape=(jax.ShapeDtypeStruct((n, hh, l), _ACT_DTYPE),
                   jax.ShapeDtypeStruct((n, 2, l), jnp.float32)),
        compiler_params=_compiler_params(*blocks),
    )(h_m, aff_t, b, bias_t)


def _bn_apply_call(x_m, aff_t):
    n, hh, l = x_m.shape
    blocks = (((hh, l), x_m.dtype), (aff_t.shape, aff_t.dtype),
              ((hh, l), jnp.float32))
    return pl.pallas_call(
        _bn_apply_kernel,
        grid=(n,),
        in_specs=[_batch_spec((hh, l)), _full_spec(aff_t.shape)],
        out_specs=_batch_spec((hh, l)),
        out_shape=jax.ShapeDtypeStruct((n, hh, l), jnp.float32),
        compiler_params=_compiler_params(*blocks),
    )(x_m, aff_t)


# ---------------------------------------------------------------------------
# Full UNetUpBlock forward
# ---------------------------------------------------------------------------
@jax.jit
def unet_up_block(x, skip, p):
    # x: (N, H, W, in_ch), skip: (N, 2H, 2W, out_ch)   (NHWC)
    n, h, w, cin = x.shape
    hh, wh = 2 * h, 2 * w
    cs = skip.shape[-1]
    cout = p["w_up"].shape[-1]
    count = float(n * hh * wh)

    # lane-merged views (free row-major reshapes at the HBM level)
    x_m = x.reshape(n, h, w * cin)
    skip_m = skip.reshape(n, hh, wh * cs)

    # --- K1: upsample + conv2x2 + ReLU + BN partials -------------------------
    w_up = p["w_up"]                                            # (2,2,Cin,Cout) HWIO
    a_up = jnp.concatenate(
        [_band_up(w_up[0] + w_up[1], w),     # even output rows: x[i] taps
         _band_up(w_up[0], w),               # odd rows, contribution of x[i]
         _band_up(w_up[1], w)],              # odd rows, contribution of x[i+1]
        axis=1).astype(_MXU_DTYPE)
    u_pre, st_up = _up_call(x_m, a_up, _tile_c(p["b_up"], 2 * wh))
    aff_up = _bn_affine(_reduce_stats(st_up, cout), p["g_up"], p["be_up"], count)

    # --- K2: BN(up)@load + (virtual) concat + conv3x3 + ReLU + BN partials ---
    w1 = p["w1"]                                                # (3,3,cs+cu,Cout)
    bs = jnp.concatenate([_band_conv3(w1[kh, :, :cs, :], wh) for kh in range(3)],
                         axis=1).astype(_MXU_DTYPE)
    bu = jnp.concatenate([_band_conv3(w1[kh, :, cs:, :], wh) for kh in range(3)],
                         axis=1).astype(_MXU_DTYPE)
    u_m = u_pre.reshape(n, hh, wh * cout)                       # free reshape
    h1_pre, st1 = _conv1_call(skip_m, u_m, jnp.tile(aff_up, (1, wh)),
                              bs, bu, _tile_c(p["b1"], wh))
    aff1 = _bn_affine(_reduce_stats(st1, cout), p["g1"], p["be1"], count)

    # --- K3: BN(h1)@load + conv3x3 + ReLU + BN partials -----------------------
    w2 = p["w2"]
    b2 = jnp.concatenate([_band_conv3(w2[kh], wh) for kh in range(3)],
                         axis=1).astype(_MXU_DTYPE)
    h2_pre, st2 = _conv2_call(h1_pre, jnp.tile(aff1, (1, wh)),
                              b2, _tile_c(p["b2"], wh))
    aff2 = _bn_affine(_reduce_stats(st2, cout), p["g2"], p["be2"], count)

    # --- K4: final BN affine ---------------------------------------------------
    out_m = _bn_apply_call(h2_pre, jnp.tile(aff2, (1, wh)))
    return out_m.reshape(n, hh, wh, cout)


# ---------------------------------------------------------------------------
# Pure-JAX reference (for correctness check)
# ---------------------------------------------------------------------------
def _ref_conv(x, w, b, pad):
    y = jax.lax.conv_general_dilated(
        x, w, window_strides=(1, 1), padding=pad,
        dimension_numbers=("NHWC", "HWIO", "NHWC"),
        precision=jax.lax.Precision.HIGHEST)
    return y + b.reshape(1, 1, 1, -1)


def _ref_bn(x, g, be):
    m = jnp.mean(x, axis=(0, 1, 2), keepdims=True)
    v = jnp.mean((x - m) ** 2, axis=(0, 1, 2), keepdims=True)
    return (x - m) * jax.lax.rsqrt(v + _BN_EPS) * g.reshape(1, 1, 1, -1) \
        + be.reshape(1, 1, 1, -1)


def unet_up_block_ref(x, skip, p):
    xu = jnp.repeat(jnp.repeat(x, 2, axis=1), 2, axis=2)
    u = _ref_bn(jax.nn.relu(_ref_conv(xu, p["w_up"], p["b_up"],
                                      [(0, 1), (0, 1)])), p["g_up"], p["be_up"])
    c = jnp.concatenate([skip, u], axis=-1)
    h = _ref_bn(jax.nn.relu(_ref_conv(c, p["w1"], p["b1"],
                                      [(1, 1), (1, 1)])), p["g1"], p["be1"])
    h = _ref_bn(jax.nn.relu(_ref_conv(h, p["w2"], p["b2"],
                                      [(1, 1), (1, 1)])), p["g2"], p["be2"])
    return h


if __name__ == "__main__":
    in_ch, out_ch = 8, 4          # standard UNet: in_ch = 2 * out_ch
    N, H, W = 2, 16, 16

    ks = jax.random.split(jax.random.PRNGKey(0), 14)
    x = jax.random.normal(ks[0], (N, H, W, in_ch), jnp.float32)
    skip = jax.random.normal(ks[1], (N, 2 * H, 2 * W, out_ch), jnp.float32)

    def vec(k, c):
        return 0.1 * jax.random.normal(k, (1, c), jnp.float32)

    p = {
        # upsample branch: Conv2d(in_ch, out_ch, kernel=2) + BN(out_ch)
        "w_up": 0.2 * jax.random.normal(ks[2], (2, 2, in_ch, out_ch), jnp.float32),
        "b_up": vec(ks[3], out_ch),
        "g_up": 1.0 + vec(ks[4], out_ch),
        "be_up": vec(ks[5], out_ch),
        # convblock conv1: Conv2d(in_ch, out_ch, kernel=3) + BN(out_ch)
        "w1": 0.2 * jax.random.normal(ks[6], (3, 3, in_ch, out_ch), jnp.float32),
        "b1": vec(ks[7], out_ch),
        "g1": 1.0 + vec(ks[8], out_ch),
        "be1": vec(ks[9], out_ch),
        # convblock conv2: Conv2d(out_ch, out_ch, kernel=3) + BN(out_ch)
        "w2": 0.2 * jax.random.normal(ks[10], (3, 3, out_ch, out_ch), jnp.float32),
        "b2": vec(ks[11], out_ch),
        "g2": 1.0 + vec(ks[12], out_ch),
        "be2": vec(ks[13], out_ch),
    }

    out = jax.block_until_ready(unet_up_block(x, skip, p))
    ref = jax.block_until_ready(unet_up_block_ref(x, skip, p))

    assert out.shape == (N, 2 * H, 2 * W, out_ch), out.shape
    err = float(jnp.max(jnp.abs(out - ref)))
    # bf16 MXU inputs + bf16 HBM intermediates across three stacked conv+BN
    # layers vs. an f32 HIGHEST-precision reference: typical max-abs error a
    # few 1e-2.  A structural bug (padding/band layout) would give O(1) error.
    assert err < 2e-1, f"max abs error vs reference: {err}"
    print("KERNEL_OK")
</pallas_src>

<mosaic_0001>
module attributes {stable_mosaic.version = 11 : i64} {
  func.func @_up_kernel(%arg0: i32, %arg1: memref<1x16x128xf32, #tpu.memory_space<vmem>>, %arg2: memref<128x384xbf16, #tpu.memory_space<vmem>>, %arg3: memref<1x256xf32, #tpu.memory_space<vmem>>, %arg4: memref<1x16x256xbf16, #tpu.memory_space<vmem>>, %arg5: memref<1x2x256xf32, #tpu.memory_space<vmem>>) attributes {dimension_semantics = [#tpu.dimension_semantics<parallel>], iteration_bounds = array<i64: 2>, scalar_prefetch = 0 : i64, scratch_operands = 0 : i64, tpu.core_type = #tpu.core_type<tc>, window_params = [{transform_indices = @transform_0, window_bounds = array<i64: 1, 16, 128>}, {pipeline_mode = #tpu.pipeline_mode<synchronous>, transform_indices = @transform_1, window_bounds = array<i64: 128, 384>}, {pipeline_mode = #tpu.pipeline_mode<synchronous>, transform_indices = @transform_2, window_bounds = array<i64: 1, 256>}, {transform_indices = @transform_3, window_bounds = array<i64: 1, 16, 256>}, {transform_indices = @transform_4, window_bounds = array<i64: 1, 2, 256>}]} {
    %cst = arith.constant 0.000000e+00 : bf16
    %0 = vector.broadcast %cst : bf16 to vector<1x128xbf16>
    %c0 = arith.constant 0 : index
    %c0_0 = arith.constant 0 : index
    %c0_1 = arith.constant 0 : index
    %1 = vector.load %arg1[%c0, %c0_0, %c0_1] : memref<1x16x128xf32, #tpu.memory_space<vmem>>, vector<1x16x128xf32>
    %2 = vector.shape_cast %1 : vector<1x16x128xf32> to vector<16x128xf32>
    %3 = arith.truncf %2 : vector<16x128xf32> to vector<16x128xbf16>
    %4 = tpu.concatenate %3, %0 in 0 : vector<16x128xbf16>, vector<1x128xbf16> -> vector<17x128xbf16>
    %c0_2 = arith.constant 0 : index
    %c0_3 = arith.constant 0 : index
    %5 = vector.load %arg2[%c0_2, %c0_3] : memref<128x384xbf16, #tpu.memory_space<vmem>>, vector<128x384xbf16>
    %cst_4 = arith.constant dense<0.000000e+00> : vector<17x384xf32>
    %6 = tpu.matmul %4, %5, %cst_4 {dimension_numbers = #tpu.dot_dimension_numbers<[1], [0], [0], [1], [0, 0, 1, 1], [], []>} : vector<17x128xbf16>, vector<128x384xbf16>, vector<17x384xf32> -> vector<17x384xf32>
    %7 = vector.extract_strided_slice %6 {offsets = [0, 0], sizes = [16, 128], strides = [1, 1]} : vector<17x384xf32> to vector<16x128xf32>
    %8 = vector.extract_strided_slice %6 {offsets = [0, 128], sizes = [16, 128], strides = [1, 1]} : vector<17x384xf32> to vector<16x128xf32>
    %9 = vector.extract_strided_slice %6 {offsets = [1, 256], sizes = [16, 128], strides = [1, 1]} : vector<17x384xf32> to vector<16x128xf32>
    %10 = arith.addf %8, %9 : vector<16x128xf32>
    %11 = tpu.concatenate %7, %10 in 1 : vector<16x128xf32>, vector<16x128xf32> -> vector<16x256xf32>
    %c0_5 = arith.constant 0 : index
    %c0_6 = arith.constant 0 : index
    %12 = vector.load %arg3[%c0_5, %c0_6] : memref<1x256xf32, #tpu.memory_space<vmem>>, vector<1x256xf32>
    %13 = vector.broadcast %12 : vector<1x256xf32> to vector<16x256xf32>
    %14 = arith.addf %11, %13 : vector<16x256xf32>
    %cst_7 = arith.constant 0.000000e+00 : f32
    %15 = vector.broadcast %cst_7 : f32 to vector<16x256xf32>
    %16 = arith.maximumf %14, %15 : vector<16x256xf32>
    %cst_8 = arith.constant dense<0.000000e+00> : vector<256xf32>
    %17 = vector.multi_reduction <add>, %16, %cst_8 [0] : vector<16x256xf32> to vector<256xf32>
    %18 = vector.shape_cast %17 : vector<256xf32> to vector<1x256xf32>
    %19 = arith.mulf %16, %16 : vector<16x256xf32>
    %cst_9 = arith.constant dense<0.000000e+00> : vector<256xf32>
    %20 = vector.multi_reduction <add>, %19, %cst_9 [0] : vector<16x256xf32> to vector<256xf32>
    %21 = vector.shape_cast %20 : vector<256xf32> to vector<1x256xf32>
    %22 = tpu.concatenate %18, %21 in 0 : vector<1x256xf32>, vector<1x256xf32> -> vector<2x256xf32>
    %c0_10 = arith.constant 0 : index
    %c0_11 = arith.constant 0 : index
    %c0_12 = arith.constant 0 : index
    %23 = vector.load %arg5[%c0_10, %c0_11, %c0_12] : memref<1x2x256xf32, #tpu.memory_space<vmem>>, vector<1x2x256xf32>
    %24 = vector.shape_cast %23 : vector<1x2x256xf32> to vector<2x256xf32>
    %25 = vector.shape_cast %22 : vector<2x256xf32> to vector<1x2x256xf32>
    tpu.vector_store %arg5[%c0_10, %c0_11, %c0_12], %25 {strides = array<i32>} : memref<1x2x256xf32, #tpu.memory_space<vmem>>, vector<1x2x256xf32>,
    %26 = arith.truncf %16 : vector<16x256xf32> to vector<16x256xbf16>
    %c0_13 = arith.constant 0 : index
    %c0_14 = arith.constant 0 : index
    %c0_15 = arith.constant 0 : index
    %27 = vector.load %arg4[%c0_13, %c0_14, %c0_15] : memref<1x16x256xbf16, #tpu.memory_space<vmem>>, vector<1x16x256xbf16>
    %28 = vector.shape_cast %27 : vector<1x16x256xbf16> to vector<16x256xbf16>
    %29 = vector.shape_cast %26 : vector<16x256xbf16> to vector<1x16x256xbf16>
    tpu.vector_store %arg4[%c0_13, %c0_14, %c0_15], %29 {strides = array<i32>} : memref<1x16x256xbf16, #tpu.memory_space<vmem>>, vector<1x16x256xbf16>,
    return
  }
  func.func @transform_0(%arg0: i32) -> (i32, i32, i32) {
    %c0_i32 = arith.constant 0 : i32
    %c0_i32_0 = arith.constant 0 : i32
    %c0_i32_1 = arith.constant 0 : i32
    return %arg0, %c0_i32, %c0_i32_0 : i32, i32, i32
  }
  func.func @transform_1(%arg0: i32) -> (i32, i32) {
    %c0_i32 = arith.constant 0 : i32
    %c0_i32_0 = arith.constant 0 : i32
    %c0_i32_1 = arith.constant 0 : i32
    return %c0_i32, %c0_i32_0 : i32, i32
  }
  func.func @transform_2(%arg0: i32) -> (i32, i32) {
    %c0_i32 = arith.constant 0 : i32
    %c0_i32_0 = arith.constant 0 : i32
    %c0_i32_1 = arith.constant 0 : i32
    return %c0_i32, %c0_i32_0 : i32, i32
  }
  func.func @transform_3(%arg0: i32) -> (i32, i32, i32) {
    %c0_i32 = arith.constant 0 : i32
    %c0_i32_0 = arith.constant 0 : i32
    %c0_i32_1 = arith.constant 0 : i32
    return %arg0, %c0_i32, %c0_i32_0 : i32, i32, i32
  }
  func.func @transform_4(%arg0: i32) -> (i32, i32, i32) {
    %c0_i32 = arith.constant 0 : i32
    %c0_i32_0 = arith.constant 0 : i32
    %c0_i32_1 = arith.constant 0 : i32
    return %arg0, %c0_i32, %c0_i32_0 : i32, i32, i32
  }
}

module attributes {stable_mosaic.version = 11 : i64} {
  func.func @_conv1_kernel(%arg0: i32, %arg1: memref<1x32x128xf32, #tpu.memory_space<vmem>>, %arg2: memref<1x32x128xbf16, #tpu.memory_space<vmem>>, %arg3: memref<2x128xf32, #tpu.memory_space<vmem>>, %arg4: memref<128x384xbf16, #tpu.memory_space<vmem>>, %arg5: memref<128x384xbf16, #tpu.memory_space<vmem>>, %arg6: memref<1x128xf32, #tpu.memory_space<vmem>>, %arg7: memref<1x32x128xbf16, #tpu.memory_space<vmem>>, %arg8: memref<1x2x128xf32, #tpu.memory_space<vmem>>) attributes {dimension_semantics = [#tpu.dimension_semantics<parallel>], iteration_bounds = array<i64: 2>, scalar_prefetch = 0 : i64, scratch_operands = 0 : i64, tpu.core_type = #tpu.core_type<tc>, window_params = [{transform_indices = @transform_0, window_bounds = array<i64: 1, 32, 128>}, {transform_indices = @transform_1, window_bounds = array<i64: 1, 32, 128>}, {pipeline_mode = #tpu.pipeline_mode<synchronous>, transform_indices = @transform_2, window_bounds = array<i64: 2, 128>}, {pipeline_mode = #tpu.pipeline_mode<synchronous>, transform_indices = @transform_3, window_bounds = array<i64: 128, 384>}, {pipeline_mode = #tpu.pipeline_mode<synchronous>, transform_indices = @transform_4, window_bounds = array<i64: 128, 384>}, {pipeline_mode = #tpu.pipeline_mode<synchronous>, transform_indices = @transform_5, window_bounds = array<i64: 1, 128>}, {transform_indices = @transform_6, window_bounds = array<i64: 1, 32, 128>}, {transform_indices = @transform_7, window_bounds = array<i64: 1, 2, 128>}]} {
    %cst = arith.constant 0.000000e+00 : bf16
    %0 = vector.broadcast %cst : bf16 to vector<1x128xbf16>
    %cst_0 = arith.constant 0.000000e+00 : bf16
    %1 = vector.broadcast %cst_0 : bf16 to vector<1x128xbf16>
    %c0 = arith.constant 0 : index
    %c0_1 = arith.constant 0 : index
    %c0_2 = arith.constant 0 : index
    %2 = vector.load %arg1[%c0, %c0_1, %c0_2] : memref<1x32x128xf32, #tpu.memory_space<vmem>>, vector<1x32x128xf32>
    %3 = vector.shape_cast %2 : vector<1x32x128xf32> to vector<32x128xf32>
    %4 = arith.truncf %3 : vector<32x128xf32> to vector<32x128xbf16>
    %5 = tpu.concatenate %0, %4, %0 in 0 : vector<1x128xbf16>, vector<32x128xbf16>, vector<1x128xbf16> -> vector<34x128xbf16>
    %c0_3 = arith.constant 0 : index
    %c0_4 = arith.constant 0 : index
    %c0_5 = arith.constant 0 : index
    %6 = vector.load %arg2[%c0_3, %c0_4, %c0_5] : memref<1x32x128xbf16, #tpu.memory_space<vmem>>, vector<1x32x128xbf16>
    %7 = vector.shape_cast %6 : vector<1x32x128xbf16> to vector<32x128xbf16>
    %8 = arith.extf %7 : vector<32x128xbf16> to vector<32x128xf32>
    %c0_6 = arith.constant 0 : index
    %c0_7 = arith.constant 0 : index
    %9 = vector.load %arg3[%c0_6, %c0_7] : memref<2x128xf32, #tpu.memory_space<vmem>>, vector<1x128xf32>
    %10 = vector.broadcast %9 : vector<1x128xf32> to vector<32x128xf32>
    %11 = arith.mulf %8, %10 : vector<32x128xf32>
    %c1 = arith.constant 1 : index
    %c0_8 = arith.constant 0 : index
    %12 = vector.load %arg3[%c1, %c0_8] : memref<2x128xf32, #tpu.memory_space<vmem>>, vector<1x128xf32>
    %13 = vector.broadcast %12 : vector<1x128xf32> to vector<32x128xf32>
    %14 = arith.addf %11, %13 : vector<32x128xf32>
    %15 = arith.truncf %14 : vector<32x128xf32> to vector<32x128xbf16>
    %16 = tpu.concatenate %1, %15, %1 in 0 : vector<1x128xbf16>, vector<32x128xbf16>, vector<1x128xbf16> -> vector<34x128xbf16>
    %c0_9 = arith.constant 0 : index
    %c0_10 = arith.constant 0 : index
    %17 = vector.load %arg4[%c0_9, %c0_10] : memref<128x384xbf16, #tpu.memory_space<vmem>>, vector<128x384xbf16>
    %cst_11 = arith.constant dense<0.000000e+00> : vector<34x384xf32>
    %18 = tpu.matmul %5, %17, %cst_11 {dimension_numbers = #tpu.dot_dimension_numbers<[1], [0], [0], [1], [0, 0, 1, 1], [], []>} : vector<34x128xbf16>, vector<128x384xbf16>, vector<34x384xf32> -> vector<34x384xf32>
    %c0_12 = arith.constant 0 : index
    %c0_13 = arith.constant 0 : index
    %19 = vector.load %arg5[%c0_12, %c0_13] : memref<128x384xbf16, #tpu.memory_space<vmem>>, vector<128x384xbf16>
    %cst_14 = arith.constant dense<0.000000e+00> : vector<34x384xf32>
    %20 = tpu.matmul %16, %19, %cst_14 {dimension_numbers = #tpu.dot_dimension_numbers<[1], [0], [0], [1], [0, 0, 1, 1], [], []>} : vector<34x128xbf16>, vector<128x384xbf16>, vector<34x384xf32> -> vector<34x384xf32>
    %21 = arith.addf %18, %20 : vector<34x384xf32>
    %22 = vector.extract_strided_slice %21 {offsets = [0, 0], sizes = [32, 128], strides = [1, 1]} : vector<34x384xf32> to vector<32x128xf32>
    %23 = vector.extract_strided_slice %21 {offsets = [1, 128], sizes = [32, 128], strides = [1, 1]} : vector<34x384xf32> to vector<32x128xf32>
    %24 = arith.addf %22, %23 : vector<32x128xf32>
    %25 = vector.extract_strided_slice %21 {offsets = [2, 256], sizes = [32, 128], strides = [1, 1]} : vector<34x384xf32> to vector<32x128xf32>
    %26 = arith.addf %24, %25 : vector<32x128xf32>
    %c0_15 = arith.constant 0 : index
    %c0_16 = arith.constant 0 : index
    %27 = vector.load %arg6[%c0_15, %c0_16] : memref<1x128xf32, #tpu.memory_space<vmem>>, vector<1x128xf32>
    %28 = vector.broadcast %27 : vector<1x128xf32> to vector<32x128xf32>
    %29 = arith.addf %26, %28 : vector<32x128xf32>
    %cst_17 = arith.constant 0.000000e+00 : f32
    %30 = vector.broadcast %cst_17 : f32 to vector<32x128xf32>
    %31 = arith.maximumf %29, %30 : vector<32x128xf32>
    %cst_18 = arith.constant dense<0.000000e+00> : vector<128xf32>
    %32 = vector.multi_reduction <add>, %31, %cst_18 [0] : vector<32x128xf32> to vector<128xf32>
    %33 = vector.shape_cast %32 : vector<128xf32> to vector<1x128xf32>
    %34 = arith.mulf %31, %31 : vector<32x128xf32>
    %cst_19 = arith.constant dense<0.000000e+00> : vector<128xf32>
    %35 = vector.multi_reduction <add>, %34, %cst_19 [0] : vector<32x128xf32> to vector<128xf32>
    %36 = vector.shape_cast %35 : vector<128xf32> to vector<1x128xf32>
    %37 = tpu.concatenate %33, %36 in 0 : vector<1x128xf32>, vector<1x128xf32> -> vector<2x128xf32>
    %c0_20 = arith.constant 0 : index
    %c0_21 = arith.constant 0 : index
    %c0_22 = arith.constant 0 : index
    %38 = vector.load %arg8[%c0_20, %c0_21, %c0_22] : memref<1x2x128xf32, #tpu.memory_space<vmem>>, vector<1x2x128xf32>
    %39 = vector.shape_cast %38 : vector<1x2x128xf32> to vector<2x128xf32>
    %40 = vector.shape_cast %37 : vector<2x128xf32> to vector<1x2x128xf32>
    tpu.vector_store %arg8[%c0_20, %c0_21, %c0_22], %40 {strides = array<i32>} : memref<1x2x128xf32, #tpu.memory_space<vmem>>, vector<1x2x128xf32>,
    %41 = arith.truncf %31 : vector<32x128xf32> to vector<32x128xbf16>
    %c0_23 = arith.constant 0 : index
    %c0_24 = arith.constant 0 : index
    %c0_25 = arith.constant 0 : index
    %42 = vector.load %arg7[%c0_23, %c0_24, %c0_25] : memref<1x32x128xbf16, #tpu.memory_space<vmem>>, vector<1x32x128xbf16>
    %43 = vector.shape_cast %42 : vector<1x32x128xbf16> to vector<32x128xbf16>
    %44 = vector.shape_cast %41 : vector<32x128xbf16> to vector<1x32x128xbf16>
    tpu.vector_store %arg7[%c0_23, %c0_24, %c0_25], %44 {strides = array<i32>} : memref<1x32x128xbf16, #tpu.memory_space<vmem>>, vector<1x32x128xbf16>,
    return
  }
  func.func @transform_0(%arg0: i32) -> (i32, i32, i32) {
    %c0_i32 = arith.constant 0 : i32
    %c0_i32_0 = arith.constant 0 : i32
    %c0_i32_1 = arith.constant 0 : i32
    return %arg0, %c0_i32, %c0_i32_0 : i32, i32, i32
  }
  func.func @transform_1(%arg0: i32) -> (i32, i32, i32) {
    %c0_i32 = arith.constant 0 : i32
    %c0_i32_0 = arith.constant 0 : i32
    %c0_i32_1 = arith.constant 0 : i32
    return %arg0, %c0_i32, %c0_i32_0 : i32, i32, i32
  }
  func.func @transform_2(%arg0: i32) -> (i32, i32) {
    %c0_i32 = arith.constant 0 : i32
    %c0_i32_0 = arith.constant 0 : i32
    %c0_i32_1 = arith.constant 0 : i32
    return %c0_i32, %c0_i32_0 : i32, i32
  }
  func.func @transform_3(%arg0: i32) -> (i32, i32) {
    %c0_i32 = arith.constant 0 : i32
    %c0_i32_0 = arith.constant 0 : i32
    %c0_i32_1 = arith.constant 0 : i32
    return %c0_i32, %c0_i32_0 : i32, i32
  }
  func.func @transform_4(%arg0: i32) -> (i32, i32) {
    %c0_i32 = arith.constant 0 : i32
    %c0_i32_0 = arith.constant 0 : i32
    %c0_i32_1 = arith.constant 0 : i32
    return %c0_i32, %c0_i32_0 : i32, i32
  }
  func.func @transform_5(%arg0: i32) -> (i32, i32) {
    %c0_i32 = arith.constant 0 : i32
    %c0_i32_0 = arith.constant 0 : i32
    %c0_i32_1 = arith.constant 0 : i32
    return %c0_i32, %c0_i32_0 : i32, i32
  }
  func.func @transform_6(%arg0: i32) -> (i32, i32, i32) {
    %c0_i32 = arith.constant 0 : i32
    %c0_i32_0 = arith.constant 0 : i32
    %c0_i32_1 = arith.constant 0 : i32
    return %arg0, %c0_i32, %c0_i32_0 : i32, i32, i32
  }
  func.func @transform_7(%arg0: i32) -> (i32, i32, i32) {
    %c0_i32 = arith.constant 0 : i32
    %c0_i32_0 = arith.constant 0 : i32
    %c0_i32_1 = arith.constant 0 : i32
    return %arg0, %c0_i32, %c0_i32_0 : i32, i32, i32
  }
}

module attributes {stable_mosaic.version = 11 : i64} {
  func.func @_conv2_kernel(%arg0: i32, %arg1: memref<1x32x128xbf16, #tpu.memory_space<vmem>>, %arg2: memref<2x128xf32, #tpu.memory_space<vmem>>, %arg3: memref<128x384xbf16, #tpu.memory_space<vmem>>, %arg4: memref<1x128xf32, #tpu.memory_space<vmem>>, %arg5: memref<1x32x128xbf16, #tpu.memory_space<vmem>>, %arg6: memref<1x2x128xf32, #tpu.memory_space<vmem>>) attributes {dimension_semantics = [#tpu.dimension_semantics<parallel>], iteration_bounds = array<i64: 2>, scalar_prefetch = 0 : i64, scratch_operands = 0 : i64, tpu.core_type = #tpu.core_type<tc>, window_params = [{transform_indices = @transform_0, window_bounds = array<i64: 1, 32, 128>}, {pipeline_mode = #tpu.pipeline_mode<synchronous>, transform_indices = @transform_1, window_bounds = array<i64: 2, 128>}, {pipeline_mode = #tpu.pipeline_mode<synchronous>, transform_indices = @transform_2, window_bounds = array<i64: 128, 384>}, {pipeline_mode = #tpu.pipeline_mode<synchronous>, transform_indices = @transform_3, window_bounds = array<i64: 1, 128>}, {transform_indices = @transform_4, window_bounds = array<i64: 1, 32, 128>}, {transform_indices = @transform_5, window_bounds = array<i64: 1, 2, 128>}]} {
    %cst = arith.constant 0.000000e+00 : bf16
    %0 = vector.broadcast %cst : bf16 to vector<1x128xbf16>
    %c0 = arith.constant 0 : index
    %c0_0 = arith.constant 0 : index
    %c0_1 = arith.constant 0 : index
    %1 = vector.load %arg1[%c0, %c0_0, %c0_1] : memref<1x32x128xbf16, #tpu.memory_space<vmem>>, vector<1x32x128xbf16>
    %2 = vector.shape_cast %1 : vector<1x32x128xbf16> to vector<32x128xbf16>
    %3 = arith.extf %2 : vector<32x128xbf16> to vector<32x128xf32>
    %c0_2 = arith.constant 0 : index
    %c0_3 = arith.constant 0 : index
    %4 = vector.load %arg2[%c0_2, %c0_3] : memref<2x128xf32, #tpu.memory_space<vmem>>, vector<1x128xf32>
    %5 = vector.broadcast %4 : vector<1x128xf32> to vector<32x128xf32>
    %6 = arith.mulf %3, %5 : vector<32x128xf32>
    %c1 = arith.constant 1 : index
    %c0_4 = arith.constant 0 : index
    %7 = vector.load %arg2[%c1, %c0_4] : memref<2x128xf32, #tpu.memory_space<vmem>>, vector<1x128xf32>
    %8 = vector.broadcast %7 : vector<1x128xf32> to vector<32x128xf32>
    %9 = arith.addf %6, %8 : vector<32x128xf32>
    %10 = arith.truncf %9 : vector<32x128xf32> to vector<32x128xbf16>
    %11 = tpu.concatenate %0, %10, %0 in 0 : vector<1x128xbf16>, vector<32x128xbf16>, vector<1x128xbf16> -> vector<34x128xbf16>
    %c0_5 = arith.constant 0 : index
    %c0_6 = arith.constant 0 : index
    %12 = vector.load %arg3[%c0_5, %c0_6] : memref<128x384xbf16, #tpu.memory_space<vmem>>, vector<128x384xbf16>
    %cst_7 = arith.constant dense<0.000000e+00> : vector<34x384xf32>
    %13 = tpu.matmul %11, %12, %cst_7 {dimension_numbers = #tpu.dot_dimension_numbers<[1], [0], [0], [1], [0, 0, 1, 1], [], []>} : vector<34x128xbf16>, vector<128x384xbf16>, vector<34x384xf32> -> vector<34x384xf32>
    %14 = vector.extract_strided_slice %13 {offsets = [0, 0], sizes = [32, 128], strides = [1, 1]} : vector<34x384xf32> to vector<32x128xf32>
    %15 = vector.extract_strided_slice %13 {offsets = [1, 128], sizes = [32, 128], strides = [1, 1]} : vector<34x384xf32> to vector<32x128xf32>
    %16 = arith.addf %14, %15 : vector<32x128xf32>
    %17 = vector.extract_strided_slice %13 {offsets = [2, 256], sizes = [32, 128], strides = [1, 1]} : vector<34x384xf32> to vector<32x128xf32>
    %18 = arith.addf %16, %17 : vector<32x128xf32>
    %c0_8 = arith.constant 0 : index
    %c0_9 = arith.constant 0 : index
    %19 = vector.load %arg4[%c0_8, %c0_9] : memref<1x128xf32, #tpu.memory_space<vmem>>, vector<1x128xf32>
    %20 = vector.broadcast %19 : vector<1x128xf32> to vector<32x128xf32>
    %21 = arith.addf %18, %20 : vector<32x128xf32>
    %cst_10 = arith.constant 0.000000e+00 : f32
    %22 = vector.broadcast %cst_10 : f32 to vector<32x128xf32>
    %23 = arith.maximumf %21, %22 : vector<32x128xf32>
    %cst_11 = arith.constant dense<0.000000e+00> : vector<128xf32>
    %24 = vector.multi_reduction <add>, %23, %cst_11 [0] : vector<32x128xf32> to vector<128xf32>
    %25 = vector.shape_cast %24 : vector<128xf32> to vector<1x128xf32>
    %26 = arith.mulf %23, %23 : vector<32x128xf32>
    %cst_12 = arith.constant dense<0.000000e+00> : vector<128xf32>
    %27 = vector.multi_reduction <add>, %26, %cst_12 [0] : vector<32x128xf32> to vector<128xf32>
    %28 = vector.shape_cast %27 : vector<128xf32> to vector<1x128xf32>
    %29 = tpu.concatenate %25, %28 in 0 : vector<1x128xf32>, vector<1x128xf32> -> vector<2x128xf32>
    %c0_13 = arith.constant 0 : index
    %c0_14 = arith.constant 0 : index
    %c0_15 = arith.constant 0 : index
    %30 = vector.load %arg6[%c0_13, %c0_14, %c0_15] : memref<1x2x128xf32, #tpu.memory_space<vmem>>, vector<1x2x128xf32>
    %31 = vector.shape_cast %30 : vector<1x2x128xf32> to vector<2x128xf32>
    %32 = vector.shape_cast %29 : vector<2x128xf32> to vector<1x2x128xf32>
    tpu.vector_store %arg6[%c0_13, %c0_14, %c0_15], %32 {strides = array<i32>} : memref<1x2x128xf32, #tpu.memory_space<vmem>>, vector<1x2x128xf32>,
    %33 = arith.truncf %23 : vector<32x128xf32> to vector<32x128xbf16>
    %c0_16 = arith.constant 0 : index
    %c0_17 = arith.constant 0 : index
    %c0_18 = arith.constant 0 : index
    %34 = vector.load %arg5[%c0_16, %c0_17, %c0_18] : memref<1x32x128xbf16, #tpu.memory_space<vmem>>, vector<1x32x128xbf16>
    %35 = vector.shape_cast %34 : vector<1x32x128xbf16> to vector<32x128xbf16>
    %36 = vector.shape_cast %33 : vector<32x128xbf16> to vector<1x32x128xbf16>
    tpu.vector_store %arg5[%c0_16, %c0_17, %c0_18], %36 {strides = array<i32>} : memref<1x32x128xbf16, #tpu.memory_space<vmem>>, vector<1x32x128xbf16>,
    return
  }
  func.func @transform_0(%arg0: i32) -> (i32, i32, i32) {
    %c0_i32 = arith.constant 0 : i32
    %c0_i32_0 = arith.constant 0 : i32
    %c0_i32_1 = arith.constant 0 : i32
    return %arg0, %c0_i32, %c0_i32_0 : i32, i32, i32
  }
  func.func @transform_1(%arg0: i32) -> (i32, i32) {
    %c0_i32 = arith.constant 0 : i32
    %c0_i32_0 = arith.constant 0 : i32
    %c0_i32_1 = arith.constant 0 : i32
    return %c0_i32, %c0_i32_0 : i32, i32
  }
  func.func @transform_2(%arg0: i32) -> (i32, i32) {
    %c0_i32 = arith.constant 0 : i32
    %c0_i32_0 = arith.constant 0 : i32
    %c0_i32_1 = arith.constant 0 : i32
    return %c0_i32, %c0_i32_0 : i32, i32
  }
  func.func @transform_3(%arg0: i32) -> (i32, i32) {
    %c0_i32 = arith.constant 0 : i32
    %c0_i32_0 = arith.constant 0 : i32
    %c0_i32_1 = arith.constant 0 : i32
    return %c0_i32, %c0_i32_0 : i32, i32
  }
  func.func @transform_4(%arg0: i32) -> (i32, i32, i32) {
    %c0_i32 = arith.constant 0 : i32
    %c0_i32_0 = arith.constant 0 : i32
    %c0_i32_1 = arith.constant 0 : i32
    return %arg0, %c0_i32, %c0_i32_0 : i32, i32, i32
  }
  func.func @transform_5(%arg0: i32) -> (i32, i32, i32) {
    %c0_i32 = arith.constant 0 : i32
    %c0_i32_0 = arith.constant 0 : i32
    %c0_i32_1 = arith.constant 0 : i32
    return %arg0, %c0_i32, %c0_i32_0 : i32, i32, i32
  }
}

module attributes {stable_mosaic.version = 11 : i64} {
  func.func @_bn_apply_kernel(%arg0: i32, %arg1: memref<1x32x128xbf16, #tpu.memory_space<vmem>>, %arg2: memref<2x128xf32, #tpu.memory_space<vmem>>, %arg3: memref<1x32x128xf32, #tpu.memory_space<vmem>>) attributes {dimension_semantics = [#tpu.dimension_semantics<parallel>], iteration_bounds = array<i64: 2>, scalar_prefetch = 0 : i64, scratch_operands = 0 : i64, tpu.core_type = #tpu.core_type<tc>, window_params = [{transform_indices = @transform_0, window_bounds = array<i64: 1, 32, 128>}, {pipeline_mode = #tpu.pipeline_mode<synchronous>, transform_indices = @transform_1, window_bounds = array<i64: 2, 128>}, {transform_indices = @transform_2, window_bounds = array<i64: 1, 32, 128>}]} {
    %c0 = arith.constant 0 : index
    %c0_0 = arith.constant 0 : index
    %c0_1 = arith.constant 0 : index
    %0 = vector.load %arg1[%c0, %c0_0, %c0_1] : memref<1x32x128xbf16, #tpu.memory_space<vmem>>, vector<1x32x128xbf16>
    %1 = vector.shape_cast %0 : vector<1x32x128xbf16> to vector<32x128xbf16>
    %2 = arith.extf %1 : vector<32x128xbf16> to vector<32x128xf32>
    %c0_2 = arith.constant 0 : index
    %c0_3 = arith.constant 0 : index
    %3 = vector.load %arg2[%c0_2, %c0_3] : memref<2x128xf32, #tpu.memory_space<vmem>>, vector<1x128xf32>
    %4 = vector.broadcast %3 : vector<1x128xf32> to vector<32x128xf32>
    %5 = arith.mulf %2, %4 : vector<32x128xf32>
    %c1 = arith.constant 1 : index
    %c0_4 = arith.constant 0 : index
    %6 = vector.load %arg2[%c1, %c0_4] : memref<2x128xf32, #tpu.memory_space<vmem>>, vector<1x128xf32>
    %7 = vector.broadcast %6 : vector<1x128xf32> to vector<32x128xf32>
    %8 = arith.addf %5, %7 : vector<32x128xf32>
    %c0_5 = arith.constant 0 : index
    %c0_6 = arith.constant 0 : index
    %c0_7 = arith.constant 0 : index
    %9 = vector.load %arg3[%c0_5, %c0_6, %c0_7] : memref<1x32x128xf32, #tpu.memory_space<vmem>>, vector<1x32x128xf32>
    %10 = vector.shape_cast %9 : vector<1x32x128xf32> to vector<32x128xf32>
    %11 = vector.shape_cast %8 : vector<32x128xf32> to vector<1x32x128xf32>
    tpu.vector_store %arg3[%c0_5, %c0_6, %c0_7], %11 {strides = array<i32>} : memref<1x32x128xf32, #tpu.memory_space<vmem>>, vector<1x32x128xf32>,
    return
  }
  func.func @transform_0(%arg0: i32) -> (i32, i32, i32) {
    %c0_i32 = arith.constant 0 : i32
    %c0_i32_0 = arith.constant 0 : i32
    %c0_i32_1 = arith.constant 0 : i32
    return %arg0, %c0_i32, %c0_i32_0 : i32, i32, i32
  }
  func.func @transform_1(%arg0: i32) -> (i32, i32) {
    %c0_i32 = arith.constant 0 : i32
    %c0_i32_0 = arith.constant 0 : i32
    %c0_i32_1 = arith.constant 0 : i32
    return %c0_i32, %c0_i32_0 : i32, i32
  }
  func.func @transform_2(%arg0: i32) -> (i32, i32, i32) {
    %c0_i32 = arith.constant 0 : i32
    %c0_i32_0 = arith.constant 0 : i32
    %c0_i32_1 = arith.constant 0 : i32
    return %arg0, %c0_i32, %c0_i32_0 : i32, i32, i32
  }
}

</mosaic_0001>

<bundles_post_ra>
// kernel: tile.39
= control target key start
LH: loop header
LB: loop body
LE: loop exit
PB: predicated region body
PF: predicated region fallthrough
CT: control target
= control target key end

     0   :  { %vm5_vm0 = vcmask 1041409   ;;  %s419_s14 = smov 124   ;;  %s420_s21 = smov 116   ;;  %vm7_vm1 = vcmask 31744   ;;  %vm17_vm2 = vcmask 1048544   ;;  %vm27_vm3 = vcmask 1015744   ;;  %s687_s0 = inlined_call_operand.vmem [shape: f32[2,32,4], index: 0, kind: input, shape index: {}]   ;;  %s688_s1 = inlined_call_operand.vmem [shape: f32[2,128], index: 1, kind: output, shape index: {}]  }
   0x1   :  { %v326_v0 = vld [vmem:[%s687_s0 + $0x1f] sm:$0x1]   ;;  %v330_v3 = vld [vmem:[%s687_s0 + $0x1d] sm:$0x1]   ;;  %v328_v6 = vld [vmem:[%s687_s0 + $0x1e] sm:$0x1]  }
   0x2   :  { %v327_v1 = vld [vmem:[%s687_s0 + $0x3e] sm:$0x2]   ;;  %v331_v4 = vld [vmem:[%s687_s0 + $0x3c] sm:$0x2]   ;;  %v329_v7 = vld [vmem:[%s687_s0 + $0x3d] sm:$0x2]  }
   0x3   :  { %v14_v2 = vsel %vm5_vm0, %v327_v1, %v326_v0  ;;  %v34_v5 = vsel %vm5_vm0, %v331_v4, %v330_v3  ;;  %v332_v8 = vld [vmem:[%s687_s0 + $0x1c] sm:$0x1]   ;;  %v24_v9 = vsel %vm5_vm0, %v329_v7, %v328_v6  ;;  %v334_v12 = vld [vmem:[%s687_s0 + $0x1b] sm:$0x1]   ;;  %v336_v14 = vld [vmem:[%s687_s0 + $0x1a] sm:$0x1]  }
   0x4   :  { %15 = vrot.lane.b32.xlu0 %v14_v2, %s419_s14  ;;  %35 = vrot.lane.b32.xlu1 %v34_v5, %s420_s21  ;;  %v333_v10 = vld [vmem:[%s687_s0 + $0x3b] sm:$0x2]   ;;  %v335_v13 = vld [vmem:[%s687_s0 + $0x3a] sm:$0x2]   ;;  %s421_s3 = smov 120   ;;  %s422_s4 = smov 112  }
   0x5   :  { %v44_v11 = vsel %vm5_vm0, %v333_v10, %v332_v8  ;;  %v337_v15 = vld [vmem:[%s687_s0 + $0x39] sm:$0x2]   ;;  %v54_v16 = vsel %vm5_vm0, %v335_v13, %v334_v12  ;;  %v338_v18 = vld [vmem:[%s687_s0 + $0x19] sm:$0x1]   ;;  %v340_v20 = vld [vmem:[%s687_s0 + $0x18] sm:$0x1]  }
   0x6   :  { %v64_v17 = vsel %vm5_vm0, %v337_v15, %v336_v14  ;;  %v339_v19 = vld [vmem:[%s687_s0 + $0x38] sm:$0x2]   ;;  %v341_v21 = vld [vmem:[%s687_s0 + $0x37] sm:$0x2]   ;;  %s423_s13 = smov 108   ;;  %s424_s14 = smov 104  }
   0x7   :  { %v74_v22 = vsel %vm5_vm0, %v339_v19, %v338_v18  ;;  %v84_v23 = vsel %vm5_vm0, %v341_v21, %v340_v20  ;;  %v342_v24 = vld [vmem:[%s687_s0 + $0x17] sm:$0x1]   ;;  %v344_v26 = vld [vmem:[%s687_s0 + $0x16] sm:$0x1]   ;;  %s425_s23 = smov 100   ;;  %s426_s24 = smov 96  }
   0x8   :  { %25 = vrot.lane.b32.xlu0 %v24_v9, %s421_s3  ;;  %45 = vrot.lane.b32.xlu1 %v44_v11, %s422_s4  ;;  %v343_v25 = vld [vmem:[%s687_s0 + $0x36] sm:$0x2]   ;;  %v345_v27 = vld [vmem:[%s687_s0 + $0x35] sm:$0x2]   ;;  %s427_s4 = smov 92   ;;  %s428_s5 = smov 88  }
   0x9   :  { %v94_v28 = vsel %vm5_vm0, %v343_v25, %v342_v24  ;;  %v104_v29 = vsel %vm5_vm0, %v345_v27, %v344_v26  ;;  %v346_v30 = vld [vmem:[%s687_s0 + $0x15] sm:$0x1]   ;;  %v348_v32 = vld [vmem:[%s687_s0 + $0x14] sm:$0x1]   ;;  %v350_v36 = vld [vmem:[%s687_s0 + $0x13] sm:$0x1]  }
   0xa   :  { %v347_v31 = vld [vmem:[%s687_s0 + $0x34] sm:$0x2]   ;;  %v349_v33 = vld [vmem:[%s687_s0 + $0x33] sm:$0x2]   ;;  %v351_v37 = vld [vmem:[%s687_s0 + $0x32] sm:$0x2]  }
   0xb   :  { %v114_v34 = vsel %vm5_vm0, %v347_v31, %v346_v30  ;;  %v124_v35 = vsel %vm5_vm0, %v349_v33, %v348_v32  ;;  %v352_v38 = vld [vmem:[%s687_s0 + $0x12] sm:$0x1]   ;;  %s430_s15 = smov 80   ;;  %v134_v40 = vsel %vm5_vm0, %v351_v37, %v350_v36  ;;  %v354_v42 = vld [vmem:[%s687_s0 + $0x11] sm:$0x1]   ;;  %s432_s29 = smov 72  }
   0xc   :  { %55 = vrot.lane.b32.xlu0 %v54_v16, %s423_s13  ;;  %65 = vrot.lane.b32.xlu1 %v64_v17, %s424_s14  ;;  %v353_v39 = vld [vmem:[%s687_s0 + $0x31] sm:$0x2]   ;;  %s429_s14 = smov 84   ;;  %v355_v43 = vld [vmem:[%s687_s0 + $0x30] sm:$0x2]   ;;  %s433_s9 = smov 68  }
   0xd   :  { %v144_v41 = vsel %vm5_vm0, %v353_v39, %v352_v38  ;;  %v356_v44 = vld [vmem:[%s687_s0 + $0x10] sm:$0x1]   ;;  %v2_v46 = vld [vmem:[%s687_s0] sm:$0x1]   ;;  %v154_v48 = vsel %vm5_vm0, %v355_v43, %v354_v42  ;;  %v358_v51 = vld [vmem:[%s687_s0 + $0xf] sm:$0x1]  }
   0xe   :  { %v357_v45 = vld [vmem:[%s687_s0 + $0x2f] sm:$0x2]   ;;  %v325_v47 = vld [vmem:[%s687_s0 + $0x1f] sm:$0x2]   ;;  %v359_v52 = vld [vmem:[%s687_s0 + $0x2e] sm:$0x2]  }
   0xf   :  { %v6_v49 = vsel %vm5_vm0, %v325_v47, %v2_v46  ;;  %v164_v50 = vsel %vm5_vm0, %v357_v45, %v356_v44  ;;  %v360_v53 = vld [vmem:[%s687_s0 + $0xe] sm:$0x1]   ;;  %s434_s10 = smov 64   ;;  %v174_v55 = vsel %vm5_vm0, %v359_v52, %v358_v51  ;;  %v362_v57 = vld [vmem:[%s687_s0 + $0xd] sm:$0x1]   ;;  %s435_s19 = smov 60  }
  0x10   :  { %75 = vrot.lane.b32.xlu0 %v74_v22, %s425_s23  ;;  %85 = vrot.lane.b32.xlu1 %v84_v23, %s426_s24  ;;  %s431_s24 = smov 76   ;;  %8 = vst.msk [vmem:[#allocation0] sm:$0x3] %vm7_vm1, %v6_v49   ;;  %v361_v54 = vld [vmem:[%s687_s0 + $0x2d] sm:$0x2]   ;;  %s436_s20 = smov 56  }
  0x11   :  { %v184_v56 = vsel %vm5_vm0, %v361_v54, %v360_v53  ;;  %v363_v58 = vld [vmem:[%s687_s0 + $0x2c] sm:$0x2]   ;;  %v364_v59 = vld [vmem:[%s687_s0 + $0xc] sm:$0x1]   ;;  %v366_v63 = vld [vmem:[%s687_s0 + $0xb] sm:$0x1]  }
  0x12   :  { %v365_v60 = vld [vmem:[%s687_s0 + $0x2b] sm:$0x2]   ;;  %v194_v61 = vsel %vm5_vm0, %v363_v58, %v362_v57  ;;  %v367_v0 = vld [vmem:[%s687_s0 + $0x2a] sm:$0x2]   ;;  %v368_v1 = vld [vmem:[%s687_s0 + $0xa] sm:$0x1]  }
  0x13   :  { %v204_v62 = vsel %vm5_vm0, %v365_v60, %v364_v59  ;;  %v369_v2 = vld [vmem:[%s687_s0 + $0x29] sm:$0x2]   ;;  %s438_s30 = smov 48   ;;  %v214_v3 = vsel %vm5_vm0, %v367_v0, %v366_v63  ;;  %v370_v5 = vld [vmem:[%s687_s0 + $0x9] sm:$0x1]   ;;  %s440_s11 = smov 40  }
  0x14   :  { %95 = vrot.lane.b32.xlu0 %v94_v28, %s427_s4  ;;  %105 = vrot.lane.b32.xlu1 %v104_v29, %s428_s5  ;;  %v224_v4 = vsel %vm5_vm0, %v369_v2, %v368_v1  ;;  %v371_v6 = vld [vmem:[%s687_s0 + $0x28] sm:$0x2]   ;;  %v372_v7 = vld [vmem:[%s687_s0 + $0x8] sm:$0x1]   ;;  %s442_s21 = smov 32   ;;  %s444_s2 = smov 24  }
  0x15   :  { %v373_v8 = vld [vmem:[%s687_s0 + $0x27] sm:$0x2]   ;;  %v234_v9 = vsel %vm5_vm0, %v371_v6, %v370_v5  ;;  %v374_v11 = vld [vmem:[%s687_s0 + $0x7] sm:$0x1]   ;;  %v376_v13 = vld [vmem:[%s687_s0 + $0x6] sm:$0x1]  }
  0x16   :  { %v244_v10 = vsel %vm5_vm0, %v373_v8, %v372_v7  ;;  %v375_v12 = vld [vmem:[%s687_s0 + $0x26] sm:$0x2]   ;;  %v377_v14 = vld [vmem:[%s687_s0 + $0x25] sm:$0x2]   ;;  %v378_v17 = vld [vmem:[%s687_s0 + $0x5] sm:$0x1]  }
  0x17   :  { %v254_v15 = vsel %vm5_vm0, %v375_v12, %v374_v11  ;;  %v264_v16 = vsel %vm5_vm0, %v377_v14, %v376_v13  ;;  %v379_v18 = vld [vmem:[%s687_s0 + $0x24] sm:$0x2]   ;;  %v380_v19 = vld [vmem:[%s687_s0 + $0x4] sm:$0x1]   ;;  %v382_v23 = vld [vmem:[%s687_s0 + $0x3] sm:$0x1]  }
  0x18   :  { %115 = vrot.lane.b32.xlu0 %v114_v34, %s429_s14  ;;  %125 = vrot.lane.b32.xlu1 %v124_v35, %s430_s15  ;;  %v381_v20 = vld [vmem:[%s687_s0 + $0x23] sm:$0x2]   ;;  %v274_v21 = vsel %vm5_vm0, %v379_v18, %v378_v17  ;;  %v383_v24 = vld [vmem:[%s687_s0 + $0x22] sm:$0x2]   ;;  %s446_s12 = smov 16   ;;  %s448_s17 = smov 8  }
  0x19   :  { %v284_v22 = vsel %vm5_vm0, %v381_v20, %v380_v19  ;;  %v384_v25 = vld [vmem:[%s687_s0 + $0x2] sm:$0x1]   ;;  %v294_v27 = vsel %vm5_vm0, %v383_v24, %v382_v23  ;;  %v386_v29 = vld [vmem:[%s687_s0 + $0x1] sm:$0x1]   ;;  %s449_s18 = smov 4   ;;  %vm37_vm4 = vcmask 982944  }
  0x1a   :  { %v385_v26 = vld [vmem:[%s687_s0 + $0x21] sm:$0x2]   ;;  %v387_v30 = vld [vmem:[%s687_s0 + $0x20] sm:$0x2]   ;;  %s447_s0 = smov 12   ;;  %vm47_vm5 = vcmask 950144  }
  0x1b   :  { %v304_v28 = vsel %vm5_vm0, %v385_v26, %v384_v25  ;;  %v314_v31 = vsel %vm5_vm0, %v387_v30, %v386_v29  ;;  %vm57_vm6 = vcmask 917344   ;;  %vm67_vm7 = vcmask 884544  }
  0x1c   :  { %135 = vrot.lane.b32.xlu0 %v134_v40, %s431_s24  ;;  %145 = vrot.lane.b32.xlu1 %v144_v41, %s432_s29  ;;  %s437_s29 = smov 52   ;;  %vm77_vm8 = vcmask 851744   ;;  %vm87_vm9 = vcmask 818944   ;;  %vm97_vm10 = vcmask 786144   ;;  %vm107_vm11 = vcmask 753344  }
  0x1d   :  { %vm117_vm12 = vcmask 720544   ;;  %vm127_vm13 = vcmask 687744   ;;  %vm137_vm14 = vcmask 654944   ;;  %vm147_vm15 = vcmask 622144  }
  0x1e   :  { %vm157_vm0 = vcmask 589344   ;;  %vm167_vm1 = vcmask 556544  }
  0x20   :  { %155 = vrot.lane.b32.xlu0 %v154_v48, %s433_s9  ;;  %165 = vrot.lane.b32.xlu1 %v164_v50, %s434_s10  ;;  %s439_s10 = smov 44  }
  0x24   :  { %175 = vrot.lane.b32.xlu0 %v174_v55, %s435_s19  ;;  %185 = vrot.lane.b32.xlu1 %v184_v56, %s436_s20  ;;  %s441_s20 = smov 36  }
  0x28   :  { %195 = vrot.lane.b32.xlu0 %v194_v61, %s437_s29  ;;  %205 = vrot.lane.b32.xlu1 %v204_v62, %s438_s30  ;;  %s443_s30 = smov 28  }
  0x2c   :  { %215 = vrot.lane.b32.xlu0 %v214_v3, %s439_s10  ;;  %225 = vrot.lane.b32.xlu1 %v224_v4, %s440_s11  ;;  %s445_s11 = smov 20  }
  0x30   :  { %235 = vrot.lane.b32.xlu0 %v234_v9, %s441_s20  ;;  %245 = vrot.lane.b32.xlu1 %v244_v10, %s442_s21 }
  0x34   :  { %255 = vrot.lane.b32.xlu0 %v254_v15, %s443_s30  ;;  %265 = vrot.lane.b32.xlu1 %v264_v16, %s444_s2 }
  0x38   :  { %275 = vrot.lane.b32.xlu0 %v274_v21, %s445_s11  ;;  %285 = vrot.lane.b32.xlu1 %v284_v22, %s446_s12 }
  0x3c   :  { %295 = vrot.lane.b32.xlu0 %v294_v27, %s447_s0  ;;  %305 = vrot.lane.b32.xlu1 %v304_v28, %s448_s17 }
  0x40   :  { %315 = vrot.lane.b32.xlu0 %v314_v31, %s449_s18 }
  0x76   :  { %v16_v32 = vpop.permute.xlu0 %15   ;;  %v36_v33 = vpop.permute.xlu1 %35  }
  0x77   :  { %18 = vst.msk [vmem:[#allocation0] sm:$0x3] %vm17_vm2, %v16_v32   ;;  %vm177_vm2 = vcmask 523744  }
  0x7a   :  { %v26_v34 = vpop.permute.xlu0 %25   ;;  %v46_v35 = vpop.permute.xlu1 %45  }
  0x7b   :  { %28 = vst.msk [vmem:[#allocation0] sm:$0x3] %vm27_vm3, %v26_v34   ;;  %vm187_vm3 = vcmask 490944  }
  0x7c   :  { %38 = vst.msk [vmem:[#allocation0] sm:$0x3] %vm37_vm4, %v36_v33   ;;  %vm197_vm4 = vcmask 458144  }
  0x7d   :  { %48 = vst.msk [vmem:[#allocation0] sm:$0x3] %vm47_vm5, %v46_v35   ;;  %vm207_vm5 = vcmask 425344  }
  0x7e   :  { %v56_v36 = vpop.permute.xlu0 %55   ;;  %v66_v37 = vpop.permute.xlu1 %65  }
  0x7f   :  { %58 = vst.msk [vmem:[#allocation0] sm:$0x3] %vm57_vm6, %v56_v36   ;;  %vm217_vm6 = vcmask 392544  }
  0x80   :  { %68 = vst.msk [vmem:[#allocation0] sm:$0x3] %vm67_vm7, %v66_v37   ;;  %vm227_vm7 = vcmask 359744  }
  0x82   :  { %v76_v38 = vpop.permute.xlu0 %75   ;;  %v86_v39 = vpop.permute.xlu1 %85  }
  0x83   :  { %78 = vst.msk [vmem:[#allocation0] sm:$0x3] %vm77_vm8, %v76_v38   ;;  %vm237_vm8 = vcmask 326944  }
  0x84   :  { %88 = vst.msk [vmem:[#allocation0] sm:$0x3] %vm87_vm9, %v86_v39   ;;  %vm247_vm9 = vcmask 294144  }
  0x86   :  { %v96_v40 = vpop.permute.xlu0 %95   ;;  %v106_v41 = vpop.permute.xlu1 %105  }
  0x87   :  { %98 = vst.msk [vmem:[#allocation0] sm:$0x3] %vm97_vm10, %v96_v40   ;;  %vm257_vm10 = vcmask 261344  }
  0x88   :  { %108 = vst.msk [vmem:[#allocation0] sm:$0x3] %vm107_vm11, %v106_v41   ;;  %vm267_vm11 = vcmask 228544  }
  0x8a   :  { %v116_v42 = vpop.permute.xlu0 %115   ;;  %v126_v43 = vpop.permute.xlu1 %125  }
  0x8b   :  { %118 = vst.msk [vmem:[#allocation0] sm:$0x3] %vm117_vm12, %v116_v42   ;;  %vm277_vm12 = vcmask 195744  }
  0x8c   :  { %128 = vst.msk [vmem:[#allocation0] sm:$0x3] %vm127_vm13, %v126_v43   ;;  %vm287_vm13 = vcmask 162944  }
  0x8e   :  { %v136_v44 = vpop.permute.xlu0 %135   ;;  %v146_v45 = vpop.permute.xlu1 %145  }
  0x8f   :  { %138 = vst.msk [vmem:[#allocation0] sm:$0x3] %vm137_vm14, %v136_v44   ;;  %vm297_vm14 = vcmask 130144  }
  0x90   :  { %148 = vst.msk [vmem:[#allocation0] sm:$0x3] %vm147_vm15, %v146_v45   ;;  %vm307_vm15 = vcmask 97344  }
  0x92   :  { %v156_v46 = vpop.permute.xlu0 %155   ;;  %v166_v47 = vpop.permute.xlu1 %165  }
  0x93   :  { %158 = vst.msk [vmem:[#allocation0] sm:$0x3] %vm157_vm0, %v156_v46   ;;  %vm317_vm0 = vcmask 64544  }
  0x94   :  { %168 = vst.msk [vmem:[#allocation0] sm:$0x3] %vm167_vm1, %v166_v47  }
  0x96   :  { %v176_v48 = vpop.permute.xlu0 %175   ;;  %v186_v49 = vpop.permute.xlu1 %185  }
  0x97   :  { %178 = vst.msk [vmem:[#allocation0] sm:$0x3] %vm177_vm2, %v176_v48  }
  0x98   :  { %188 = vst.msk [vmem:[#allocation0] sm:$0x3] %vm187_vm3, %v186_v49  }
  0x9a   :  { %v196_v50 = vpop.permute.xlu0 %195   ;;  %v206_v51 = vpop.permute.xlu1 %205  }
  0x9b   :  { %198 = vst.msk [vmem:[#allocation0] sm:$0x3] %vm197_vm4, %v196_v50  }
  0x9c   :  { %208 = vst.msk [vmem:[#allocation0] sm:$0x3] %vm207_vm5, %v206_v51  }
  0x9e   :  { %v216_v52 = vpop.permute.xlu0 %215   ;;  %v226_v53 = vpop.permute.xlu1 %225  }
  0x9f   :  { %218 = vst.msk [vmem:[#allocation0] sm:$0x3] %vm217_vm6, %v216_v52  }
  0xa0   :  { %228 = vst.msk [vmem:[#allocation0] sm:$0x3] %vm227_vm7, %v226_v53  }
  0xa2   :  { %v236_v54 = vpop.permute.xlu0 %235   ;;  %v246_v55 = vpop.permute.xlu1 %245  }
  0xa3   :  { %238 = vst.msk [vmem:[#allocation0] sm:$0x3] %vm237_vm8, %v236_v54  }
  0xa4   :  { %248 = vst.msk [vmem:[#allocation0] sm:$0x3] %vm247_vm9, %v246_v55  }
  0xa6   :  { %v256_v56 = vpop.permute.xlu0 %255   ;;  %v266_v57 = vpop.permute.xlu1 %265  }
  0xa7   :  { %258 = vst.msk [vmem:[#allocation0] sm:$0x3] %vm257_vm10, %v256_v56  }
  0xa8   :  { %268 = vst.msk [vmem:[#allocation0] sm:$0x3] %vm267_vm11, %v266_v57  }
  0xaa   :  { %v276_v58 = vpop.permute.xlu0 %275   ;;  %v286_v59 = vpop.permute.xlu1 %285  }
  0xab   :  { %278 = vst.msk [vmem:[#allocation0] sm:$0x3] %vm277_vm12, %v276_v58  }
  0xac   :  { %288 = vst.msk [vmem:[#allocation0] sm:$0x3] %vm287_vm13, %v286_v59  }
  0xae   :  { %v296_v60 = vpop.permute.xlu0 %295   ;;  %v306_v61 = vpop.permute.xlu1 %305  }
  0xaf   :  { %298 = vst.msk [vmem:[#allocation0] sm:$0x3] %vm297_vm14, %v296_v60  }
  0xb0   :  { %308 = vst.msk [vmem:[#allocation0] sm:$0x3] %vm307_vm15, %v306_v61  }
  0xb2   :  { %v316_v62 = vpop.permute.xlu0 %315  }
  0xb3   :  { %318 = vst.msk [vmem:[#allocation0] sm:$0x3] %vm317_vm0, %v316_v62  }
  0xba   :  { %v322_v63 = vld [vmem:[#allocation0] sm:$0x3] }
  0xbb   :  { %324 = vst [vmem:[%s688_s1] sm:$0x3] %v322_v63 }

// kernel: unet_up_block.4
= control target key start
LH: loop header
LB: loop body
LE: loop exit
PB: predicated region body
PF: predicated region fallthrough
CT: control target
= control target key end

     0   :  { %s804_s15 = smov 0   ;;  %s911_s0 = inlined_call_operand.vmem [shape: f32[2,16,128], index: 0, kind: input, shape index: {}]   ;;  %s912_s1 = inlined_call_operand.vmem [shape: bf16[128,384], index: 1, kind: input, shape index: {}]   ;;  %s913_s2 = inlined_call_operand.vmem [shape: f32[1,256], index: 2, kind: input, shape index: {}]   ;;  %s914_s3 = inlined_call_operand.vmem [shape: bf16[2,16,256], index: 3, kind: output, shape index: {0}]   ;;  %s915_s4 = inlined_call_operand.vmem [shape: f32[2,2,256], index: 4, kind: output, shape index: {1}]  }
   0x1 LB: > { %s654_s16 = sadd.s32 4294967295, %s776_s15   ;;  %p658_p0 = scmp.ge.s32.totalorder %s776_s15, 1  ;;  %s776_s15 = sphi %s804_s15, %s15_s15  }
   0x2   : > { %p165_p1 = scmp.lt.s32.totalorder %s776_s15, 3 }
   0x4   : > { %p166_p2 = pnand %p658_p0, %p165_p1 }
   0x5   : > { %v738_v0 = vld [vmem:[%s912_s1 + $0x4] ss:$12 sps:$4 sm:$0xff] (!%p166_p2)   ;;  %v740_v1 = vld [vmem:[%s912_s1 + $0x8] ss:$12 sps:$4 sm:$0xff] (!%p166_p2)   ;;  %v778_v2 = vmov (!%p166_p2), 0   ;;  %p196_p3 = scmp.lt.s32.totalorder (!%p166_p2), %s654_s16, 1  ;;  %v487_v28 = vlaneseq (!%p166_p2) }
   0x6   : > { %169 = sbr.rel (%p166_p2) target bundleno = 283 (0x11b), region = 32  ;;  %407 = vmatprep.mubr.bf16.mxu0 (!%p166_p2), %v778_v2  ;;  %375 = vmatprep.subr.bf16.mxu0 (!%p166_p2), %v738_v0  ;;  %v741_v3 = vld [vmem:[%s912_s1] ss:$12 sps:$4 sm:$0xff] (!%p166_p2)   ;;  %v742_v4 = vld [vmem:[%s912_s1 + $0x1c] ss:$12 sps:$4 sm:$0xff] (!%p166_p2)   ;;  %vm475_vm0 = vcmask (!%p166_p2), 1046528  }
   0x7   : > { %709 = vmatprep.subr.bf16.mxu1 (!%p166_p2), %v740_v1  ;;  %376 = vmatpush1.bf16.msra.mxu0 (!%p166_p2), %v741_v3  ;;  %v744_v5 = vld [vmem:[%s912_s1 + $0x20] ss:$12 sps:$4 sm:$0xff] (!%p166_p2)   ;;  %v745_v6 = vld [vmem:[%s912_s1 + $0x18] ss:$12 sps:$4 sm:$0xff] (!%p166_p2)   ;;  %v749_v9 = vld [vmem:[%s912_s1 + $0x30] ss:$12 sps:$4 sm:$0xff] (!%p166_p2)  }
   0x8   : > { %710 = vmatpush3.bf16.msra.mxu1 (!%p166_p2), %v740_v1  ;;  %377 = vmatprep.subr.bf16.mxu0 (!%p166_p2), %v742_v4  ;;  %v746_v7 = vld [vmem:[%s912_s1 + $0x34] ss:$12 sps:$4 sm:$0xff] (!%p166_p2)   ;;  %v748_v8 = vld [vmem:[%s912_s1 + $0x38] ss:$12 sps:$4 sm:$0xff] (!%p166_p2)   ;;  %v752_v11 = vld [vmem:[%s912_s1 + $0x50] ss:$12 sps:$4 sm:$0xff] (!%p166_p2)  }
   0x9   : > { %711 = vmatprep.subr.bf16.mxu1 (!%p166_p2), %v744_v5  ;;  %v750_v10 = vld [vmem:[%s912_s1 + $0x4c] ss:$12 sps:$4 sm:$0xff] (!%p166_p2)   ;;  %v753_v12 = vld [vmem:[%s912_s1 + $0x48] ss:$12 sps:$4 sm:$0xff] (!%p166_p2)   ;;  %v754_v13 = vld [vmem:[%s912_s1 + $0x64] ss:$12 sps:$4 sm:$0xff] (!%p166_p2)  }
   0xa   : > { %v756_v14 = vld [vmem:[%s912_s1 + $0x68] ss:$12 sps:$4 sm:$0xff] (!%p166_p2)   ;;  %v757_v15 = vld [vmem:[%s912_s1 + $0x60] ss:$12 sps:$4 sm:$0xff] (!%p166_p2)   ;;  %v761_v20 = vld [vmem:[%s912_s1 + $0x78] ss:$12 sps:$4 sm:$0xff] (!%p166_p2)  }
   0xb   : > { %378 = vmatpush1.bf16.msra.mxu0 (!%p166_p2), %v745_v6  ;;  %v758_v16 = vld [vmem:[%s912_s1 + $0x7c] ss:$12 sps:$4 sm:$0xff] (!%p166_p2)   ;;  %v760_v17 = vld [vmem:[%s912_s1 + $0x80] ss:$12 sps:$4 sm:$0xff] (!%p166_p2)   ;;  %v764_v23 = vld [vmem:[%s912_s1 + $0x98] ss:$12 sps:$4 sm:$0xff] (!%p166_p2)  }
   0xc   : > { %712 = vmatpush3.bf16.msra.mxu1 (!%p166_p2), %v744_v5  ;;  %379 = vmatprep.subr.bf16.mxu0 (!%p166_p2), %v746_v7  ;;  %v762_v22 = vld [vmem:[%s912_s1 + $0x94] ss:$12 sps:$4 sm:$0xff] (!%p166_p2)   ;;  %v765_v24 = vld [vmem:[%s912_s1 + $0x90] ss:$12 sps:$4 sm:$0xff] (!%p166_p2)   ;;  %v766_v25 = vld [vmem:[%s912_s1 + $0xac] ss:$12 sps:$4 sm:$0xff] (!%p166_p2)  }
   0xd   : > { %s917_s16 = smov (!%p196_p3, %s654_s16), 1  ;;  %713 = vmatprep.subr.bf16.mxu1 %v748_v8  ;;  %v768_v26 = vld [vmem:[%s912_s1 + $0xb0] ss:$12 sps:$4 sm:$0xff]   ;;  %v769_v27 = vld [vmem:[%s912_s1 + $0xa8] ss:$12 sps:$4 sm:$0xff]   ;;  %v488_v29 = vshrl.u32 %v487_v28, 7 }
   0xe   : > { %s694_s17 = sshll.u32 %s917_s16, 4  ;;  %v485_v31 = vld [vmem:[%s913_s2] sm:$0x3]  ;;  %vm537_vm1 = vcmask 1040384  }
   0xf   : > { %380 = vmatpush1.bf16.msra.mxu0 %v749_v9  ;;  %s200_s26 = scalar_lea.vmem %s911_s0, %s694_s17  ;;  %v489_v30 = vsub.s32 0, %v488_v29  ;;  %v493_v35 = vsub.s32 1, %v488_v29 }
  0x10   : > { %714 = vmatpush3.bf16.msra.mxu1 %v748_v8  ;;  %381 = vmatprep.subr.bf16.mxu0 %v750_v10  ;;  %v212_v18 = vld [vmem:[%s200_s26] sm:$0xff]  ;;  %v213_v19 = vld [vmem:[%s200_s26 + $0x8] sm:$0xff]  ;;  %s205_s26 = scalar_lea.vmem %s914_s3, %s694_s17  ;;  %s696_s17 = sshll.u32 %s917_s16, 2 }
  0x11   : > { %715 = vmatprep.subr.bf16.mxu1 %v752_v11  ;;  %v214_v21 = vpack.c.bf16 %v213_v19, %v212_v18  ;;  %v490_v32 = vrot.slane %v485_v31, %v489_v30  ;;  %v494_v48 = vrot.slane %v485_v31, %v493_v35  ;;  %s210_s29 = scalar_lea.vmem %s915_s4, %s696_s17 }
  0x13   : > { %382 = vmatpush1.bf16.msra.mxu0 %v753_v12  ;;  %725 = vmatprep.mubr.bf16.mxu1 %v214_v21 }
  0x14   : > { %716 = vmatpush3.bf16.msra.mxu1 %v752_v11  ;;  %383 = vmatprep.subr.bf16.mxu0 %v754_v13 }
  0x15   : > { %717 = vmatprep.subr.bf16.mxu1 %v756_v14 }
  0x17   : > { %384 = vmatpush1.bf16.msra.mxu0 %v757_v15 }
  0x18   : > { %718 = vmatpush3.bf16.msra.mxu1 %v756_v14  ;;  %385 = vmatprep.subr.bf16.mxu0 %v758_v16 }
  0x19   : > { %719 = vmatprep.subr.bf16.mxu1 %v760_v17 }
  0x1b   : > { %386 = vmatpush1.bf16.msra.mxu0 %v761_v20 }
  0x1c   : > { %720 = vmatpush3.bf16.msra.mxu1 %v760_v17  ;;  %387 = vmatprep.subr.bf16.mxu0 %v762_v22 }
  0x1d   : > { %721 = vmatprep.subr.bf16.mxu1 %v764_v23 }
  0x1f   : > { %388 = vmatpush1.bf16.msra.mxu0 %v765_v24 }
  0x20   : > { %722 = vmatpush3.bf16.msra.mxu1 %v764_v23  ;;  %389 = vmatprep.subr.bf16.mxu0 %v766_v25 }
  0x21   : > { %723 = vmatprep.subr.bf16.mxu1 %v768_v26 }
  0x23   : > { %390 = vmatpush1.bf16.msra.mxu0 %v769_v27 }
  0x24   : > { %724 = vmatpush3.bf16.msra.mxu1 %v768_v26 }
  0x26   : > { %408 = vmatmul.mubr.bf16.vlgmr.msra.gmra.mrb[0].mxu0 %v214_v21 }
  0x27   : > { %726 = vmatmul.mubr.bf16.vlgmr.msra.gmra.mrb[0].mxu1 %v778_v2  ;;  %417 = vmatprep.mubr.bf16.mxu0 %v778_v2 }
  0x2e   : > { %418 = vmatmul.mubr.bf16.gmra.mrb[4].mxu0 %v778_v2 }
  0xf9   : > { %v409_v33 = vpop.f32.mrb[0].mxu0 }
  0xfa   : > { %v727_v34 = vpop.f32.mrb[0].mxu1  ;;  %v497_v36 = vadd.f32 %v490_v32, %v409_v33  ;;  %v411_v37 = vpop.f32.mrb[1].mxu0 }
  0xfb   : > { %v458_v38 = vpop.f32.mrb[1].mxu1  ;;  %v413_v39 = vpop.f32.mrb[2].mxu0  ;;  %v479_v45 = vrot.slane %v727_v34, 1 }
  0xfc   : > { %v728_v40 = vpop.f32.mrb[2].mxu1  ;;  %v501_v41 = vmax.f32 %v497_v36, 0.0  ;;  %v499_v42 = vadd.f32 %v490_v32, %v413_v39  ;;  %v415_v43 = vpop.f32.mrb[3].mxu0  ;;  %v476_v46 = vrot.slane %v458_v38, 1 }
  0xfd   : > { %v461_v44 = vpop.f32.mrb[3].mxu1 }
  0xfe   : > { %v477_v47 = vrot.slane %v461_v44, 1  ;;  %v519_v49 = vmul.f32 %v501_v41, %v501_v41  ;;  %v503_v50 = vmax.f32 %v499_v42, 0.0 }
 0x100   : > { %v478_v51 = vsel %vm475_vm0, %v476_v46, %v477_v47  ;;  %v480_v52 = vsel %vm475_vm0, %v477_v47, %v479_v45  ;;  %v505_v53 = vadd.f32 %v503_v50, %v501_v41  ;;  %v521_v54 = vmul.f32 %v503_v50, %v503_v50 }
 0x101   : > { %v483_v55 = vadd.f32 %v478_v51, %v411_v37  ;;  %v484_v56 = vadd.f32 %v480_v52, %v415_v43  ;;  %v419_v57 = vpop.f32.mrb[4].mxu0 }
 0x102   : > { %v506_v58 = vrot.slane %v505_v53, 4  ;;  %v523_v59 = vadd.f32 %v521_v54, %v519_v49  ;;  %v420_v62 = vpop.f32.mrb[5].mxu0 }
 0x103   : > { %v498_v60 = vadd.f32 %v494_v48, %v483_v55  ;;  %v500_v61 = vadd.f32 %v494_v48, %v484_v56  ;;  %v421_v63 = vpop.f32.mrb[6].mxu0 }
 0x104   : > { %v507_v0 = vadd.f32 %v506_v58, %v505_v53  ;;  %v524_v1 = vrot.slane %v523_v59, 4  ;;  %v422_v4 = vpop.f32.mrb[7].mxu0 }
 0x105   : > { %v502_v2 = vmax.f32 %v498_v60, 0.0  ;;  %v504_v3 = vmax.f32 %v500_v61, 0.0 }
 0x106   : > { %v508_v5 = vrot.slane %v507_v0, 2  ;;  %v525_v6 = vadd.f32 %v524_v1, %v523_v59 }
 0x107   : > { %v512_v7 = vadd.f32 %v504_v3, %v502_v2  ;;  %v520_v8 = vmul.f32 %v502_v2, %v502_v2  ;;  %v522_v9 = vmul.f32 %v504_v3, %v504_v3  ;;  %v697_v10 = vpack.c.bf16 %v502_v2, %v501_v41 }
 0x108   : > { %v698_v11 = vpack.c.bf16 %v504_v3, %v503_v50  ;;  %v509_v12 = vadd.f32 %v508_v5, %v507_v0  ;;  %v526_v13 = vrot.slane %v525_v6, 2 }
 0x109   : > { %v513_v14 = vrot.slane %v512_v7, 4  ;;  %v530_v15 = vadd.f32 %v522_v9, %v520_v8  ;;  %564 = vst [vmem:[%s205_s26] sm:$0xff] %v697_v10 }
 0x10a   : > { %565 = vst [vmem:[%s205_s26 + $0x8] sm:$0xff] %v698_v11  ;;  %v510_v16 = vrot.slane %v509_v12, 1  ;;  %v527_v17 = vadd.f32 %v526_v13, %v525_v6 }
 0x10b   : > { %v514_v18 = vadd.f32 %v513_v14, %v512_v7  ;;  %v531_v19 = vrot.slane %v530_v15, 4 }
 0x10c   : > { %v528_v20 = vrot.slane %v527_v17, 1  ;;  %v511_v23 = vadd.f32 %v510_v16, %v509_v12 }
 0x10d   : > { %v515_v21 = vrot.slane %v514_v18, 2  ;;  %v532_v22 = vadd.f32 %v531_v19, %v530_v15 }
 0x10e   : > { %v529_v24 = vadd.f32 %v528_v20, %v527_v17 }
 0x10f   : > { %v516_v25 = vadd.f32 %v515_v21, %v514_v18  ;;  %v533_v26 = vrot.slane %v532_v22, 2 }
 0x110   : > { %v538_v27 = vsel %vm537_vm1, %v511_v23, %v529_v24 }
 0x111   : > { %v517_v28 = vrot.slane %v516_v25, 1  ;;  %v534_v29 = vadd.f32 %v533_v26, %v532_v22 }
 0x113   : > { %v535_v30 = vrot.slane %v534_v29, 1  ;;  %v518_v31 = vadd.f32 %v517_v28, %v516_v25 }
 0x115   : > { %v536_v32 = vadd.f32 %v535_v30, %v534_v29 }
 0x117   : > { %v539_v33 = vsel %vm537_vm1, %v518_v31, %v536_v32 }
 0x118   : > { %v542_v34 = vcombine.low %v538_v27, %v539_v33 }
 0x11a   : > { %689 = vst.sshfl [vmem:[%s210_s29] sm:$0x33 pattern:$0x76325410] %v542_v34 }
 0x11b PF: > { %s15_s15 = sadd.s32 1, %s776_s15  }
 0x11c   : > { %p12_p4 = scmp.ge.s32.totalorder %s15_s15, 4  }
 0x11e   :  { %14 = sbr.rel (!%p12_p4) target bundleno = 1 (0x1), region = 74 }

// kernel: unet_up_block.6
= control target key start
LH: loop header
LB: loop body
LE: loop exit
PB: predicated region body
PF: predicated region fallthrough
CT: control target
= control target key end

     0   :  { %s948_s18 = smov 0   ;;  %s1094_s0 = inlined_call_operand.vmem [shape: bf16[2,32,128], index: 0, kind: input, shape index: {}]   ;;  %s1095_s1 = inlined_call_operand.vmem [shape: f32[2,128], index: 1, kind: input, shape index: {}]   ;;  %s1096_s2 = inlined_call_operand.vmem [shape: bf16[128,384], index: 2, kind: input, shape index: {}]   ;;  %s1097_s3 = inlined_call_operand.vmem [shape: f32[1,128], index: 3, kind: input, shape index: {}]   ;;  %s1098_s4 = inlined_call_operand.vmem [shape: bf16[2,32,128], index: 4, kind: output, shape index: {0}]   ;;  %s1099_s5 = inlined_call_operand.vmem [shape: f32[2,2,128], index: 5, kind: output, shape index: {1}]  }
   0x1 LB: > { %s756_s19 = sadd.s32 4294967295, %s913_s18   ;;  %p760_p0 = scmp.ge.s32.totalorder %s913_s18, 1  ;;  %s913_s18 = sphi %s948_s18, %s16_s18  }
   0x2   : > { %p190_p1 = scmp.lt.s32.totalorder %s913_s18, 3 }
   0x4   : > { %p191_p2 = pnand %p760_p0, %p190_p1 }
   0x5   : > { %v875_v0 = vld [vmem:[%s1096_s2 + $0x4] ss:$12 sps:$4 sm:$0xff] (!%p191_p2)   ;;  %v915_v1 = vmov (!%p191_p2), 0.0   ;;  %v877_v2 = vld [vmem:[%s1096_s2 + $0x8] ss:$12 sps:$4 sm:$0xff] (!%p191_p2)   ;;  %vm916_vm0 = vmmov (!%p191_p2), 0  }
   0x6   : > { %194 = sbr.rel (%p191_p2) target bundleno = 298 (0x12a), region = 36  ;;  %836 = vmatprep.subr.bf16.mxu1 (!%p191_p2), %v915_v1  ;;  %852 = vmatprep.mubr.msk.bf16.mxu1 (!%p191_p2), %vm916_vm0, %v915_v1  ;;  %v878_v3 = vld [vmem:[%s1096_s2] ss:$12 sps:$4 sm:$0xff] (!%p191_p2)   ;;  %p222_p3 = scmp.lt.s32.totalorder (!%p191_p2), %s756_s19, 1  ;;  %v879_v4 = vld [vmem:[%s1096_s2 + $0x1c] ss:$12 sps:$4 sm:$0xff] (!%p191_p2)  }
   0x7   : > { %448 = vmatprep.subr.bf16.mxu0 (!%p191_p2), %v875_v0  ;;  %837 = vmatpush3.bf16.msra.mxu1 (!%p191_p2), %v877_v2  ;;  %v917_v5 = vmov (!%p191_p2), 0   ;;  %v881_v6 = vld [vmem:[%s1096_s2 + $0x20] ss:$12 sps:$4 sm:$0xff] (!%p191_p2)   ;;  %v882_v7 = vld [vmem:[%s1096_s2 + $0x18] ss:$12 sps:$4 sm:$0xff] (!%p191_p2)   ;;  %vm284_vm1 = vcmask (!%p191_p2), 1040384  }
   0x8   : > { %480 = vmatprep.mubr.bf16.mxu0 (!%p191_p2), %v917_v5  ;;  %449 = vmatpush1.bf16.msra.mxu0 (!%p191_p2), %v878_v3  ;;  %v883_v8 = vld [vmem:[%s1096_s2 + $0x34] ss:$12 sps:$4 sm:$0xff] (!%p191_p2)   ;;  %v885_v9 = vld [vmem:[%s1096_s2 + $0x38] ss:$12 sps:$4 sm:$0xff] (!%p191_p2)   ;;  %v886_v10 = vld [vmem:[%s1096_s2 + $0x30] ss:$12 sps:$4 sm:$0xff] (!%p191_p2)  }
   0x9   : > { %838 = vmatprep.subr.bf16.mxu1 (!%p191_p2), %v915_v1  ;;  %450 = vmatprep.subr.bf16.mxu0 (!%p191_p2), %v879_v4  ;;  %v887_v11 = vld [vmem:[%s1096_s2 + $0x4c] ss:$12 sps:$4 sm:$0xff] (!%p191_p2)   ;;  %v889_v12 = vld [vmem:[%s1096_s2 + $0x50] ss:$12 sps:$4 sm:$0xff] (!%p191_p2)   ;;  %v890_v13 = vld [vmem:[%s1096_s2 + $0x48] ss:$12 sps:$4 sm:$0xff] (!%p191_p2)  }
   0xa   : > { %v891_v14 = vld [vmem:[%s1096_s2 + $0x64] ss:$12 sps:$4 sm:$0xff] (!%p191_p2)   ;;  %v893_v15 = vld [vmem:[%s1096_s2 + $0x68] ss:$12 sps:$4 sm:$0xff] (!%p191_p2)   ;;  %v894_v16 = vld [vmem:[%s1096_s2 + $0x60] ss:$12 sps:$4 sm:$0xff] (!%p191_p2)  }
   0xb   : > { %839 = vmatpush3.bf16.msra.mxu1 (!%p191_p2), %v881_v6  ;;  %v895_v17 = vld [vmem:[%s1096_s2 + $0x7c] ss:$12 sps:$4 sm:$0xff] (!%p191_p2)   ;;  %v897_v19 = vld [vmem:[%s1096_s2 + $0x80] ss:$12 sps:$4 sm:$0xff] (!%p191_p2)   ;;  %v898_v24 = vld [vmem:[%s1096_s2 + $0x78] ss:$12 sps:$4 sm:$0xff] (!%p191_p2)  }
   0xc   : > { %451 = vmatpush1.bf16.msra.mxu0 (!%p191_p2), %v882_v7  ;;  %840 = vmatprep.subr.bf16.mxu1 (!%p191_p2), %v915_v1  ;;  %v766_v23 = vld [vmem:[%s1095_s1] ss:$0 sm:$0xff] (!%p191_p2)  ;;  %v767_v25 = vld [vmem:[%s1095_s1 + $0x1] ss:$0 sm:$0xff] (!%p191_p2)  ;;  %v901_v33 = vld [vmem:[%s1096_s2 + $0x98] ss:$12 sps:$4 sm:$0xff] (!%p191_p2)  }
   0xd   : > { %s1103_s19 = smov (!%p222_p3, %s756_s19), 1  ;;  %452 = vmatprep.subr.bf16.mxu0 %v883_v8  ;;  %v899_v28 = vld [vmem:[%s1096_s2 + $0x94] ss:$12 sps:$4 sm:$0xff]   ;;  %v902_v36 = vld [vmem:[%s1096_s2 + $0x90] ss:$12 sps:$4 sm:$0xff]   ;;  %vm592_vm4 = vcmask 1045504  }
   0xe   : > { %s799_s21 = sshll.u32 %s1103_s19, 4  ;;  %v903_v39 = vld [vmem:[%s1096_s2 + $0xac] ss:$12 sps:$4 sm:$0xff]   ;;  %v905_v42 = vld [vmem:[%s1096_s2 + $0xb0] ss:$12 sps:$4 sm:$0xff]   ;;  %vm569_vm5 = vcmask 1046528  }
   0xf   : > { %841 = vmatpush3.bf16.msra.mxu1 %v885_v9  ;;  %s226_s28 = scalar_lea.vmem %s1094_s0, %s799_s21  ;;  %vm265_vm2 = vsmask.f32 256  ;;  %v906_v45 = vld [vmem:[%s1096_s2 + $0xa8] ss:$12 sps:$4 sm:$0xff]   ;;  %s231_s10 = scalar_lea.vmem %s1098_s4, %s799_s21 }
  0x10   : > { %453 = vmatpush1.bf16.msra.mxu0 %v886_v10  ;;  %842 = vmatprep.subr.bf16.mxu1 %v915_v1  ;;  %v806_v18 = vld [vmem:[%s226_s28] sm:$0xff]   ;;  %v823_v22 = vld [vmem:[%s226_s28 + $0x8] sm:$0xff]   ;;  %vm1055_vm3 = vmand %vm284_vm1, %vm265_vm2  ;;  %s765_s21 = sshll.u32 %s1103_s19, 1 }
  0x11   : > { %454 = vmatprep.subr.bf16.mxu0 %v887_v11  ;;  %v807_v20 = vunpack.c.l.bf16 %v806_v18  ;;  %v808_v21 = vunpack.c.h.bf16 %v806_v18  ;;  %v811_v26 = vunpack.c.l.bf16 %v823_v22  ;;  %v812_v27 = vunpack.c.h.bf16 %v823_v22  ;;  %s235_s13 = scalar_lea.vmem %s1099_s5, %s765_s21 }
  0x13   : > { %843 = vmatpush3.bf16.msra.mxu1 %v889_v12  ;;  %v250_v29 = vmul.f32 %v807_v20, %v766_v23  ;;  %v251_v30 = vmul.f32 %v808_v21, %v766_v23  ;;  %v252_v31 = vmul.f32 %v811_v26, %v766_v23  ;;  %v253_v32 = vmul.f32 %v812_v27, %v766_v23  ;;  %v792_v12 = vld [vmem:[%s1097_s3] ss:$0 sm:$0xff] }
  0x14   : > { %455 = vmatpush1.bf16.msra.mxu0 %v890_v13  ;;  %844 = vmatprep.subr.bf16.mxu1 %v915_v1 }
  0x15   : > { %456 = vmatprep.subr.bf16.mxu0 %v891_v14  ;;  %v259_v34 = vadd.f32 %v767_v25, %v250_v29  ;;  %v260_v35 = vadd.f32 %v767_v25, %v251_v30  ;;  %v261_v37 = vadd.f32 %v767_v25, %v252_v31  ;;  %v262_v38 = vadd.f32 %v767_v25, %v253_v32 }
  0x17   : > { %845 = vmatpush3.bf16.msra.mxu1 %v893_v15  ;;  %v263_v40 = vpack.c.bf16 %v260_v35, %v259_v34  ;;  %v264_v41 = vpack.c.bf16 %v262_v38, %v261_v37 }
  0x18   : > { %457 = vmatpush1.bf16.msra.mxu0 %v894_v16  ;;  %846 = vmatprep.subr.bf16.mxu1 %v915_v1 }
  0x19   : > { %458 = vmatprep.subr.bf16.mxu0 %v895_v17  ;;  %v267_v43 = vshrl.u32 %v263_v40, 16  ;;  %v270_v44 = vshll.u32 %v263_v40, 16  ;;  %v274_v46 = vshrl.u32 %v264_v41, 16  ;;  %v277_v51 = vshll.u32 %v264_v41, 16 }
  0x1b   : > { %847 = vmatpush3.bf16.msra.mxu1 %v897_v19  ;;  %v269_v47 = vrot.slane %v267_v43, 7  ;;  %v276_v50 = vrot.slane %v274_v46, 7 }
  0x1c   : > { %459 = vmatpush1.bf16.msra.mxu0 %v898_v24  ;;  %848 = vmatprep.subr.bf16.mxu1 %v915_v1 }
  0x1d   : > { %460 = vmatprep.subr.bf16.mxu0 %v899_v28  ;;  %v272_v49 = vor.u32 %v270_v44, %v269_v47  ;;  %v279_v53 = vor.u32 %v277_v51, %v276_v50  ;;  %v287_v55 = vsel %vm1055_vm3, %v276_v50, 0 }
  0x1f   : > { %849 = vmatpush3.bf16.msra.mxu1 %v901_v33  ;;  %v286_v52 = vsel %vm1055_vm3, 0, %v272_v49  ;;  %v280_v54 = vsel %vm265_vm2, %v269_v47, %v279_v53 }
  0x20   : > { %461 = vmatpush1.bf16.msra.mxu0 %v902_v36  ;;  %850 = vmatprep.subr.bf16.mxu1 %v915_v1 }
  0x21   : > { %462 = vmatprep.subr.bf16.mxu0 %v903_v39 }
  0x23   : > { %851 = vmatpush3.bf16.msra.mxu1 %v905_v42 }
  0x24   : > { %463 = vmatpush1.bf16.msra.mxu0 %v906_v45 }
  0x26   : > { %853 = vmatmul.mubr.bf16.vlgmr.msra.gmra.mrb[0].mxu1 %v286_v52 }
  0x27   : > { %481 = vmatmul.mubr.bf16.vlgmr.msra.gmra.mrb[0].mxu0 %v286_v52  ;;  %856 = vmatprep.mubr.msk.bf16.mxu1 %vm916_vm0, %v915_v1 }
  0x28   : > { %490 = vmatprep.mubr.bf16.mxu0 %v917_v5 }
  0x2e   : > { %857 = vmatmul.mubr.bf16.gmra.mrb[4].mxu1 %v280_v54 }
  0x2f   : > { %491 = vmatmul.mubr.bf16.gmra.mrb[4].mxu0 %v280_v54  ;;  %860 = vmatprep.mubr.msk.bf16.mxu1 %vm916_vm0, %v915_v1 }
  0x30   : > { %500 = vmatprep.mubr.bf16.mxu0 %v917_v5 }
  0x36   : > { %861 = vmatmul.mubr.bf16.gmra.mrb[8].mxu1 %v287_v55 }
  0x37   : > { %501 = vmatmul.mubr.bf16.gmra.mrb[8].mxu0 %v287_v55 }
  0xf9   : > { %v542_v56 = vpop.f32.mrb[0].mxu1 }
  0xfa   : > { %v482_v57 = vpop.f32.mrb[0].mxu0  ;;  %v593_v58 = vrot.slane %v542_v56, 2  ;;  %v854_v59 = vpop.f32.mrb[1].mxu1 }
  0xfb   : > { %v484_v60 = vpop.f32.mrb[1].mxu0  ;;  %v545_v61 = vpop.f32.mrb[2].mxu1 }
  0xfc   : > { %v486_v62 = vpop.f32.mrb[2].mxu0  ;;  %v594_v63 = vrot.slane %v545_v61, 2  ;;  %v855_v0 = vpop.f32.mrb[3].mxu1  ;;  %v570_v1 = vrot.slane %v484_v60, 1 }
  0xfd   : > { %v488_v2 = vpop.f32.mrb[3].mxu0 }
  0xfe   : > { %v595_v3 = vsel %vm592_vm4, %v593_v58, %v594_v63  ;;  %v571_v4 = vrot.slane %v488_v2, 1 }
 0x100   : > { %v572_v5 = vsel %vm569_vm5, %v570_v1, %v571_v4 }
 0x101   : > { %v583_v6 = vadd.f32 %v572_v5, %v482_v57  ;;  %v550_v7 = vpop.f32.mrb[4].mxu1 }
 0x102   : > { %v596_v8 = vrot.slane %v550_v7, 2  ;;  %v492_v9 = vpop.f32.mrb[4].mxu0  ;;  %v858_v10 = vpop.f32.mrb[5].mxu1 }
 0x103   : > { %v606_v11 = vadd.f32 %v595_v3, %v583_v6  ;;  %v494_v13 = vpop.f32.mrb[5].mxu0  ;;  %v553_v14 = vpop.f32.mrb[6].mxu1 }
 0x104   : > { %v597_v15 = vsel %vm592_vm4, %v594_v63, %v596_v8  ;;  %v573_v16 = vrot.slane %v494_v13, 1  ;;  %v496_v17 = vpop.f32.mrb[6].mxu0  ;;  %v598_v18 = vrot.slane %v553_v14, 2  ;;  %v859_v19 = vpop.f32.mrb[7].mxu1 }
 0x105   : > { %v498_v20 = vpop.f32.mrb[7].mxu0  ;;  %v617_v21 = vadd.f32 %v792_v12, %v606_v11 }
 0x106   : > { %v574_v22 = vsel %vm569_vm5, %v571_v4, %v573_v16  ;;  %v599_v23 = vsel %vm592_vm4, %v596_v8, %v598_v18  ;;  %v575_v24 = vrot.slane %v498_v20, 1 }
 0x107   : > { %v584_v25 = vadd.f32 %v574_v22, %v486_v62  ;;  %v621_v30 = vmax.f32 %v617_v21, 0.0 }
 0x108   : > { %v576_v26 = vsel %vm569_vm5, %v573_v16, %v575_v24 }
 0x109   : > { %v607_v27 = vadd.f32 %v597_v15, %v584_v25  ;;  %v585_v28 = vadd.f32 %v576_v26, %v492_v9  ;;  %v558_v29 = vpop.f32.mrb[8].mxu1  ;;  %v634_v45 = vmul.f32 %v621_v30, %v621_v30 }
 0x10a   : > { %v600_v31 = vrot.slane %v558_v29, 2  ;;  %v502_v32 = vpop.f32.mrb[8].mxu0  ;;  %v862_v33 = vpop.f32.mrb[9].mxu1 }
 0x10b   : > { %v618_v34 = vadd.f32 %v792_v12, %v607_v27  ;;  %v608_v35 = vadd.f32 %v599_v23, %v585_v28  ;;  %v503_v36 = vpop.f32.mrb[9].mxu0  ;;  %v561_v37 = vpop.f32.mrb[10].mxu1 }
 0x10c   : > { %v601_v38 = vsel %vm592_vm4, %v598_v18, %v600_v31  ;;  %v577_v39 = vrot.slane %v503_v36, 1  ;;  %v505_v40 = vpop.f32.mrb[10].mxu0  ;;  %v863_v41 = vpop.f32.mrb[11].mxu1 }
 0x10d   : > { %v622_v42 = vmax.f32 %v618_v34, 0.0  ;;  %v619_v43 = vadd.f32 %v792_v12, %v608_v35  ;;  %v506_v44 = vpop.f32.mrb[11].mxu0 }
 0x10e   : > { %v578_v46 = vsel %vm569_vm5, %v575_v24, %v577_v39 }
 0x10f   : > { %v625_v47 = vadd.f32 %v622_v42, %v621_v30  ;;  %v635_v48 = vmul.f32 %v622_v42, %v622_v42  ;;  %v816_v49 = vpack.c.bf16 %v622_v42, %v621_v30  ;;  %v623_v50 = vmax.f32 %v619_v43, 0.0 }
 0x110   : > { %v586_v51 = vadd.f32 %v578_v46, %v496_v17 }
 0x111   : > { %v638_v52 = vadd.f32 %v635_v48, %v634_v45  ;;  %817 = vst [vmem:[%s231_s10] sm:$0xff] %v816_v49   ;;  %v626_v53 = vadd.f32 %v625_v47, %v623_v50  ;;  %v636_v54 = vmul.f32 %v623_v50, %v623_v50 }
 0x112   : > { %v609_v55 = vadd.f32 %v601_v38, %v586_v51 }
 0x113   : > { %v639_v56 = vadd.f32 %v638_v52, %v636_v54 }
 0x114   : > { %v620_v57 = vadd.f32 %v792_v12, %v609_v55 }
 0x116   : > { %v624_v58 = vmax.f32 %v620_v57, 0.0 }
 0x118   : > { %v627_v59 = vadd.f32 %v626_v53, %v624_v58  ;;  %v637_v60 = vmul.f32 %v624_v58, %v624_v58  ;;  %v821_v61 = vpack.c.bf16 %v624_v58, %v623_v50 }
 0x11a   : > { %v628_v62 = vrot.slane %v627_v59, 4  ;;  %v640_v63 = vadd.f32 %v639_v56, %v637_v60  ;;  %824 = vst [vmem:[%s231_s10 + $0x8] sm:$0xff] %v821_v61  }
 0x11c   : > { %v629_v0 = vadd.f32 %v628_v62, %v627_v59  ;;  %v641_v2 = vrot.slane %v640_v63, 4 }
 0x11e   : > { %v630_v1 = vrot.slane %v629_v0, 2  ;;  %v642_v3 = vadd.f32 %v641_v2, %v640_v63 }
 0x120   : > { %v631_v4 = vadd.f32 %v630_v1, %v629_v0  ;;  %v643_v5 = vrot.slane %v642_v3, 2 }
 0x122   : > { %v632_v6 = vrot.slane %v631_v4, 1  ;;  %v644_v7 = vadd.f32 %v643_v5, %v642_v3 }
 0x124   : > { %v645_v8 = vrot.slane %v644_v7, 1  ;;  %v633_v9 = vadd.f32 %v632_v6, %v631_v4 }
 0x126   : > { %v646_v10 = vadd.f32 %v645_v8, %v644_v7 }
 0x128   : > { %v648_v11 = vsel %vm284_vm1, %v633_v9, %v646_v10 }
 0x129   : > { %649 = vst [vmem:[%s235_s13] sm:$0x3] %v648_v11 }
 0x12a PF: > { %s16_s18 = sadd.s32 1, %s913_s18  }
 0x12b   : > { %p13_p4 = scmp.ge.s32.totalorder %s16_s18, 4  }
 0x12d   :  { %15 = sbr.rel (!%p13_p4) target bundleno = 1 (0x1), region = 78 }

// kernel: unet_up_block.5
= control target key start
LH: loop header
LB: loop body
LE: loop exit
PB: predicated region body
PF: predicated region fallthrough
CT: control target
= control target key end

     0   :  { %s1468_s24 = smov 0   ;;  %s1722_s0 = inlined_call_operand.vmem [shape: f32[2,32,128], index: 0, kind: input, shape index: {}]   ;;  %s1723_s1 = inlined_call_operand.vmem [shape: bf16[2,32,128], index: 1, kind: input, shape index: {}]   ;;  %s1724_s2 = inlined_call_operand.vmem [shape: f32[2,128], index: 2, kind: input, shape index: {}]   ;;  %s1725_s3 = inlined_call_operand.vmem [shape: bf16[128,384], index: 3, kind: input, shape index: {}]   ;;  %s1726_s4 = inlined_call_operand.vmem [shape: bf16[128,384], index: 4, kind: input, shape index: {}]   ;;  %s1727_s5 = inlined_call_operand.vmem [shape: f32[1,128], index: 5, kind: input, shape index: {}]   ;;  %s1728_s6 = inlined_call_operand.vmem [shape: bf16[2,32,128], index: 6, kind: output, shape index: {0}]   ;;  %s1729_s7 = inlined_call_operand.vmem [shape: f32[2,2,128], index: 7, kind: output, shape index: {1}]  }
   0x1 LB: > { %s1144_s25 = sadd.s32 4294967295, %s1423_s24   ;;  %p1148_p0 = scmp.ge.s32.totalorder %s1423_s24, 1  ;;  %s1423_s24 = sphi %s1468_s24, %s18_s24  }
   0x2   : > { %p250_p1 = scmp.lt.s32.totalorder %s1423_s24, 3 }
   0x4   : > { %p251_p2 = pnand %p1148_p0, %p250_p1 }
   0x5   : > { %v1353_v0 = vld [vmem:[%s1726_s4 + $0x4] ss:$12 sps:$4 sm:$0xff] (!%p251_p2)   ;;  %v1425_v1 = vmov (!%p251_p2), 0.0   ;;  %v1355_v2 = vld [vmem:[%s1726_s4 + $0x8] ss:$12 sps:$4 sm:$0xff] (!%p251_p2)   ;;  %vm1426_vm0 = vmmov (!%p251_p2), 0  }
   0x6   : > { %254 = sbr.rel (%p251_p2) target bundleno = 330 (0x14a), region = 44  ;;  %1262 = vmatprep.subr.bf16.mxu1 (!%p251_p2), %v1425_v1  ;;  %1278 = vmatprep.mubr.msk.bf16.mxu1 (!%p251_p2), %vm1426_vm0, %v1425_v1  ;;  %v1356_v3 = vld [vmem:[%s1726_s4] ss:$12 sps:$4 sm:$0xff] (!%p251_p2)   ;;  %v1357_v4 = vld [vmem:[%s1726_s4 + $0x1c] ss:$12 sps:$4 sm:$0xff] (!%p251_p2)   ;;  %v1427_v5 = vmov (!%p251_p2), 0  }
   0x7   : > { %580 = vmatprep.subr.bf16.mxu0 (!%p251_p2), %v1353_v0  ;;  %1263 = vmatpush3.bf16.msra.mxu1 (!%p251_p2), %v1355_v2  ;;  %v1359_v6 = vld [vmem:[%s1726_s4 + $0x20] ss:$12 sps:$4 sm:$0xff] (!%p251_p2)   ;;  %v1360_v7 = vld [vmem:[%s1726_s4 + $0x18] ss:$12 sps:$4 sm:$0xff] (!%p251_p2)   ;;  %p291_p3 = scmp.lt.s32.totalorder (!%p251_p2), %s1144_s25, 1  ;;  %vm336_vm1 = vcmask (!%p251_p2), 1040384  }
   0x8   : > { %612 = vmatprep.mubr.bf16.mxu0 (!%p251_p2), %v1427_v5  ;;  %581 = vmatpush1.bf16.msra.mxu0 (!%p251_p2), %v1356_v3  ;;  %v1361_v8 = vld [vmem:[%s1726_s4 + $0x34] ss:$12 sps:$4 sm:$0xff] (!%p251_p2)   ;;  %v1363_v9 = vld [vmem:[%s1726_s4 + $0x38] ss:$12 sps:$4 sm:$0xff] (!%p251_p2)   ;;  %v1364_v10 = vld [vmem:[%s1726_s4 + $0x30] ss:$12 sps:$4 sm:$0xff] (!%p251_p2)  }
   0x9   : > { %1264 = vmatprep.subr.bf16.mxu1 (!%p251_p2), %v1425_v1  ;;  %582 = vmatprep.subr.bf16.mxu0 (!%p251_p2), %v1357_v4  ;;  %v1365_v11 = vld [vmem:[%s1726_s4 + $0x4c] ss:$12 sps:$4 sm:$0xff] (!%p251_p2)   ;;  %v1367_v12 = vld [vmem:[%s1726_s4 + $0x50] ss:$12 sps:$4 sm:$0xff] (!%p251_p2)   ;;  %v1368_v13 = vld [vmem:[%s1726_s4 + $0x48] ss:$12 sps:$4 sm:$0xff] (!%p251_p2)  }
   0xa   : > { %v1369_v14 = vld [vmem:[%s1726_s4 + $0x64] ss:$12 sps:$4 sm:$0xff] (!%p251_p2)   ;;  %v1371_v15 = vld [vmem:[%s1726_s4 + $0x68] ss:$12 sps:$4 sm:$0xff] (!%p251_p2)   ;;  %v1372_v16 = vld [vmem:[%s1726_s4 + $0x60] ss:$12 sps:$4 sm:$0xff] (!%p251_p2)  }
   0xb   : > { %1265 = vmatpush3.bf16.msra.mxu1 (!%p251_p2), %v1359_v6  ;;  %v1373_v17 = vld [vmem:[%s1726_s4 + $0x7c] ss:$12 sps:$4 sm:$0xff] (!%p251_p2)   ;;  %v1375_v18 = vld [vmem:[%s1726_s4 + $0x80] ss:$12 sps:$4 sm:$0xff] (!%p251_p2)   ;;  %v1376_v22 = vld [vmem:[%s1726_s4 + $0x78] ss:$12 sps:$4 sm:$0xff] (!%p251_p2)  }
   0xc   : > { %583 = vmatpush1.bf16.msra.mxu0 (!%p251_p2), %v1360_v7  ;;  %1266 = vmatprep.subr.bf16.mxu1 (!%p251_p2), %v1425_v1  ;;  %v1156_v21 = vld [vmem:[%s1724_s2] ss:$0 sm:$0xff] (!%p251_p2)  ;;  %v1157_v28 = vld [vmem:[%s1724_s2 + $0x1] ss:$0 sm:$0xff] (!%p251_p2)  ;;  %v1379_v33 = vld [vmem:[%s1726_s4 + $0x98] ss:$12 sps:$4 sm:$0xff] (!%p251_p2)  }
   0xd   : > { %584 = vmatprep.subr.bf16.mxu0 %v1361_v8  ;;  %s1733_s25 = smov (!%p291_p3, %s1144_s25), 1  ;;  %v1377_v27 = vld [vmem:[%s1726_s4 + $0x94] ss:$12 sps:$4 sm:$0xff]   ;;  %v1380_v34 = vld [vmem:[%s1726_s4 + $0x90] ss:$12 sps:$4 sm:$0xff]   ;;  %vm968_vm4 = vcmask 1045504  }
   0xe   : > { %s1214_s8 = sshll.u32 %s1733_s25, 4  ;;  %v1381_v38 = vld [vmem:[%s1726_s4 + $0xac] ss:$12 sps:$4 sm:$0xff]   ;;  %vm317_vm2 = vsmask.f32 256  ;;  %s1213_s12 = sshll.u32 %s1733_s25, 5 }
   0xf   : > { %1267 = vmatpush3.bf16.msra.mxu1 %v1363_v9  ;;  %s300_s15 = scalar_lea.vmem %s1723_s1, %s1214_s8  ;;  %v1383_v41 = vld [vmem:[%s1726_s4 + $0xb0] ss:$12 sps:$4 sm:$0xff]   ;;  %v1384_v43 = vld [vmem:[%s1726_s4 + $0xa8] ss:$12 sps:$4 sm:$0xff]   ;;  %vm1579_vm3 = vmand %vm336_vm1, %vm317_vm2  ;;  %s1626_s21 = scalar_lea.vmem %s1722_s0, %s1213_s12  ;;  %vm945_vm5 = vcmask 1046528  }
  0x10   : > { %585 = vmatpush1.bf16.msra.mxu0 %v1364_v10  ;;  %1268 = vmatprep.subr.bf16.mxu1 %v1425_v1  ;;  %v1221_v19 = vld [vmem:[%s300_s15] sm:$0xff]   ;;  %v1238_v20 = vld [vmem:[%s300_s15 + $0x8] sm:$0xff]   ;;  %v1393_v61 = vld [vmem:[%s1725_s3 + $0x30] ss:$12 sps:$4 sm:$0xff]   ;;  %s305_s14 = scalar_lea.vmem %s1728_s6, %s1214_s8  ;;  %s1155_s8 = sshll.u32 %s1733_s25, 1 }
  0x11   : > { %586 = vmatprep.subr.bf16.mxu0 %v1365_v11  ;;  %v1222_v23 = vunpack.c.l.bf16 %v1221_v19  ;;  %v1223_v24 = vunpack.c.h.bf16 %v1221_v19  ;;  %v1226_v25 = vunpack.c.l.bf16 %v1238_v20  ;;  %v1227_v26 = vunpack.c.h.bf16 %v1238_v20  ;;  %v1387_v47 = vld [vmem:[%s1725_s3 + $0x4] ss:$12 sps:$4 sm:$0xff]   ;;  %v1385_v50 = vld [vmem:[%s1725_s3] ss:$12 sps:$4 sm:$0xff]   ;;  %v1388_v51 = vld [vmem:[%s1725_s3 + $0x8] ss:$12 sps:$4 sm:$0xff]   ;;  %s309_s17 = scalar_lea.vmem %s1729_s7, %s1155_s8 }
  0x12   : > { %v1391_v55 = vld [vmem:[%s1725_s3 + $0x1c] ss:$12 sps:$4 sm:$0xff]   ;;  %v1389_v57 = vld [vmem:[%s1725_s3 + $0x18] ss:$12 sps:$4 sm:$0xff]   ;;  %v1392_v58 = vld [vmem:[%s1725_s3 + $0x20] ss:$12 sps:$4 sm:$0xff]  }
  0x13   : > { %1269 = vmatpush3.bf16.msra.mxu1 %v1367_v12  ;;  %v353_v29 = vmul.f32 %v1222_v23, %v1156_v21  ;;  %v354_v30 = vmul.f32 %v1223_v24, %v1156_v21  ;;  %v355_v31 = vmul.f32 %v1226_v25, %v1156_v21  ;;  %v356_v32 = vmul.f32 %v1227_v26, %v1156_v21  ;;  %v1395_v60 = vld [vmem:[%s1725_s3 + $0x34] ss:$12 sps:$4 sm:$0xff]   ;;  %v1396_v62 = vld [vmem:[%s1725_s3 + $0x38] ss:$12 sps:$4 sm:$0xff]   ;;  %v1400_v3 = vld [vmem:[%s1725_s3 + $0x50] ss:$12 sps:$4 sm:$0xff]  }
  0x14   : > { %587 = vmatpush1.bf16.msra.mxu0 %v1368_v13  ;;  %1270 = vmatprep.subr.bf16.mxu1 %v1425_v1  ;;  %v1399_v0 = vld [vmem:[%s1725_s3 + $0x4c] ss:$12 sps:$4 sm:$0xff]   ;;  %v1397_v2 = vld [vmem:[%s1725_s3 + $0x48] ss:$12 sps:$4 sm:$0xff]   ;;  %v1403_v4 = vld [vmem:[%s1725_s3 + $0x64] ss:$12 sps:$4 sm:$0xff]  }
  0x15   : > { %588 = vmatprep.subr.bf16.mxu0 %v1369_v14  ;;  %v362_v35 = vadd.f32 %v1157_v28, %v353_v29  ;;  %v363_v36 = vadd.f32 %v1157_v28, %v354_v30  ;;  %v364_v37 = vadd.f32 %v1157_v28, %v355_v31  ;;  %v365_v39 = vadd.f32 %v1157_v28, %v356_v32  ;;  %v311_v6 = vld [vmem:[%s1626_s21] sm:$0xff]  ;;  %v312_v7 = vld [vmem:[%s1626_s21 + $0x8] sm:$0xff]  ;;  %v1409_v19 = vld [vmem:[%s1725_s3 + $0x90] ss:$12 sps:$4 sm:$0xff]  }
  0x16   : > { %v1401_v8 = vld [vmem:[%s1725_s3 + $0x60] ss:$12 sps:$4 sm:$0xff]   ;;  %v1404_v9 = vld [vmem:[%s1725_s3 + $0x68] ss:$12 sps:$4 sm:$0xff]   ;;  %v315_v11 = vpack.c.bf16 %v312_v7, %v311_v6  ;;  %v1405_v13 = vld [vmem:[%s1725_s3 + $0x78] ss:$12 sps:$4 sm:$0xff]  }
  0x17   : > { %1271 = vmatpush3.bf16.msra.mxu1 %v1371_v15  ;;  %v366_v40 = vpack.c.bf16 %v363_v36, %v362_v35  ;;  %v367_v42 = vpack.c.bf16 %v365_v39, %v364_v37  ;;  %v1407_v12 = vld [vmem:[%s1725_s3 + $0x7c] ss:$12 sps:$4 sm:$0xff]   ;;  %v1408_v14 = vld [vmem:[%s1725_s3 + $0x80] ss:$12 sps:$4 sm:$0xff]   ;;  %v1412_v20 = vld [vmem:[%s1725_s3 + $0x98] ss:$12 sps:$4 sm:$0xff]  }
  0x18   : > { %589 = vmatpush1.bf16.msra.mxu0 %v1372_v16  ;;  %1272 = vmatprep.subr.bf16.mxu1 %v1425_v1  ;;  %v319_v15 = vshrl.u32 %v315_v11, 16  ;;  %v1411_v16 = vld [vmem:[%s1725_s3 + $0x94] ss:$12 sps:$4 sm:$0xff]   ;;  %v1415_v24 = vld [vmem:[%s1725_s3 + $0xac] ss:$12 sps:$4 sm:$0xff]  }
  0x19   : > { %590 = vmatprep.subr.bf16.mxu0 %v1373_v17  ;;  %v369_v45 = vshrl.u32 %v366_v40, 16  ;;  %v372_v46 = vshll.u32 %v366_v40, 16  ;;  %v376_v49 = vshrl.u32 %v367_v42, 16  ;;  %v379_v54 = vshll.u32 %v367_v42, 16  ;;  %v313_v17 = vld [vmem:[%s1626_s21 + $0x10] sm:$0xff] }
  0x1a   : > { %v321_v21 = vrot.slane %v319_v15, 7  ;;  %v1413_v25 = vld [vmem:[%s1725_s3 + $0xa8] ss:$12 sps:$4 sm:$0xff]   ;;  %v1416_v26 = vld [vmem:[%s1725_s3 + $0xb0] ss:$12 sps:$4 sm:$0xff]  }
  0x1b   : > { %1273 = vmatpush3.bf16.msra.mxu1 %v1375_v18  ;;  %v371_v48 = vrot.slane %v369_v45, 7  ;;  %v378_v53 = vrot.slane %v376_v49, 7  ;;  %v314_v18 = vld [vmem:[%s1626_s21 + $0x18] sm:$0xff] }
  0x1c   : > { %591 = vmatpush1.bf16.msra.mxu0 %v1376_v22  ;;  %1274 = vmatprep.subr.bf16.mxu1 %v1425_v1  ;;  %v322_v22 = vshll.u32 %v315_v11, 16  ;;  %v316_v23 = vpack.c.bf16 %v314_v18, %v313_v17 }
  0x1d   : > { %592 = vmatprep.subr.bf16.mxu0 %v1377_v27  ;;  %v374_v52 = vor.u32 %v372_v46, %v371_v48  ;;  %v381_v59 = vor.u32 %v379_v54, %v378_v53  ;;  %v387_v10 = vsel %vm1579_vm3, %v378_v53, 0 }
  0x1e   : > { %v324_v27 = vor.u32 %v322_v22, %v321_v21  ;;  %v326_v28 = vshrl.u32 %v316_v23, 16  ;;  %v329_v31 = vshll.u32 %v316_v23, 16 }
  0x1f   : > { %1275 = vmatpush3.bf16.msra.mxu1 %v1379_v33  ;;  %v386_v56 = vsel %vm1579_vm3, 0, %v374_v52  ;;  %v382_v63 = vsel %vm317_vm2, %v371_v48, %v381_v59 }
  0x20   : > { %593 = vmatpush1.bf16.msra.mxu0 %v1380_v34  ;;  %1276 = vmatprep.subr.bf16.mxu1 %v1425_v1  ;;  %v338_v29 = vsel %vm1579_vm3, 0, %v324_v27  ;;  %v328_v30 = vrot.slane %v326_v28, 7 }
  0x21   : > { %594 = vmatprep.subr.bf16.mxu0 %v1381_v38 }
  0x22   : > { %v331_v32 = vor.u32 %v329_v31, %v328_v30  ;;  %v339_v34 = vsel %vm1579_vm3, %v328_v30, 0 }
  0x23   : > { %1277 = vmatpush3.bf16.msra.mxu1 %v1383_v41 }
  0x24   : > { %595 = vmatpush1.bf16.msra.mxu0 %v1384_v43  ;;  %1290 = vmatprep.subr.bf16.mxu1 %v1425_v1  ;;  %v332_v33 = vsel %vm317_vm2, %v321_v21, %v331_v32 }
  0x25   : > { %824 = vmatprep.subr.bf16.mxu0 %v1387_v47 }
  0x26   : > { %1279 = vmatmul.mubr.bf16.vlgmr.msra.gmra.mrb[0].mxu1 %v386_v56 }
  0x27   : > { %613 = vmatmul.mubr.bf16.vlgmr.msra.gmra.mrb[0].mxu0 %v386_v56  ;;  %1291 = vmatpush3.bf16.msra.mxu1 %v1388_v51  ;;  %v1206_v51 = vld [vmem:[%s1727_s5] ss:$0 sm:$0xff] }
  0x28   : > { %825 = vmatpush1.bf16.msra.mxu0 %v1385_v50  ;;  %1292 = vmatprep.subr.bf16.mxu1 %v1425_v1 }
  0x29   : > { %826 = vmatprep.subr.bf16.mxu0 %v1391_v55  ;;  %1282 = vmatprep.mubr.msk.bf16.mxu1 %vm1426_vm0, %v1425_v1 }
  0x2a   : > { %622 = vmatprep.mubr.bf16.mxu0 %v1427_v5 }
  0x2b   : > { %1293 = vmatpush3.bf16.msra.mxu1 %v1392_v58 }
  0x2c   : > { %827 = vmatpush1.bf16.msra.mxu0 %v1389_v57  ;;  %1294 = vmatprep.subr.bf16.mxu1 %v1425_v1 }
  0x2d   : > { %828 = vmatprep.subr.bf16.mxu0 %v1395_v60 }
  0x2e   : > { %1283 = vmatmul.mubr.bf16.gmra.mrb[4].mxu1 %v382_v63 }
  0x2f   : > { %623 = vmatmul.mubr.bf16.gmra.mrb[4].mxu0 %v382_v63  ;;  %1295 = vmatpush3.bf16.msra.mxu1 %v1396_v62 }
  0x30   : > { %829 = vmatpush1.bf16.msra.mxu0 %v1393_v61  ;;  %1296 = vmatprep.subr.bf16.mxu1 %v1425_v1 }
  0x31   : > { %830 = vmatprep.subr.bf16.mxu0 %v1399_v0  ;;  %1286 = vmatprep.mubr.msk.bf16.mxu1 %vm1426_vm0, %v1425_v1 }
  0x32   : > { %632 = vmatprep.mubr.bf16.mxu0 %v1427_v5 }
  0x33   : > { %1297 = vmatpush3.bf16.msra.mxu1 %v1400_v3 }
  0x34   : > { %831 = vmatpush1.bf16.msra.mxu0 %v1397_v2  ;;  %1298 = vmatprep.subr.bf16.mxu1 %v1425_v1 }
  0x35   : > { %832 = vmatprep.subr.bf16.mxu0 %v1403_v4 }
  0x36   : > { %1287 = vmatmul.mubr.bf16.gmra.mrb[8].mxu1 %v387_v10 }
  0x37   : > { %633 = vmatmul.mubr.bf16.gmra.mrb[8].mxu0 %v387_v10  ;;  %1299 = vmatpush3.bf16.msra.mxu1 %v1404_v9 }
  0x38   : > { %833 = vmatpush1.bf16.msra.mxu0 %v1401_v8  ;;  %1300 = vmatprep.subr.bf16.mxu1 %v1425_v1 }
  0x39   : > { %834 = vmatprep.subr.bf16.mxu0 %v1407_v12  ;;  %1306 = vmatprep.mubr.msk.bf16.mxu1 %vm1426_vm0, %v1425_v1 }
  0x3a   : > { %856 = vmatprep.mubr.bf16.mxu0 %v1427_v5 }
  0x3b   : > { %1301 = vmatpush3.bf16.msra.mxu1 %v1408_v14 }
  0x3c   : > { %835 = vmatpush1.bf16.msra.mxu0 %v1405_v13  ;;  %1302 = vmatprep.subr.bf16.mxu1 %v1425_v1 }
  0x3d   : > { %836 = vmatprep.subr.bf16.mxu0 %v1411_v16 }
  0x3f   : > { %1303 = vmatpush3.bf16.msra.mxu1 %v1412_v20 }
  0x40   : > { %837 = vmatpush1.bf16.msra.mxu0 %v1409_v19  ;;  %1304 = vmatprep.subr.bf16.mxu1 %v1425_v1 }
  0x41   : > { %838 = vmatprep.subr.bf16.mxu0 %v1415_v24 }
  0x43   : > { %1305 = vmatpush3.bf16.msra.mxu1 %v1416_v26 }
  0x44   : > { %839 = vmatpush1.bf16.msra.mxu0 %v1413_v25 }
  0x46   : > { %1307 = vmatmul.mubr.bf16.vlgmr.msra.gmra.mrb[0].mxu1 %v338_v29 }
  0x47   : > { %857 = vmatmul.mubr.bf16.vlgmr.msra.gmra.mrb[0].mxu0 %v338_v29  ;;  %1310 = vmatprep.mubr.msk.bf16.mxu1 %vm1426_vm0, %v1425_v1 }
  0x48   : > { %866 = vmatprep.mubr.bf16.mxu0 %v1427_v5 }
  0x4e   : > { %1311 = vmatmul.mubr.bf16.gmra.mrb[4].mxu1 %v332_v33 }
  0x4f   : > { %867 = vmatmul.mubr.bf16.gmra.mrb[4].mxu0 %v332_v33  ;;  %1314 = vmatprep.mubr.msk.bf16.mxu1 %vm1426_vm0, %v1425_v1 }
  0x50   : > { %876 = vmatprep.mubr.bf16.mxu0 %v1427_v5 }
  0x56   : > { %1315 = vmatmul.mubr.bf16.gmra.mrb[8].mxu1 %v339_v34 }
  0x57   : > { %877 = vmatmul.mubr.bf16.gmra.mrb[8].mxu0 %v339_v34 }
 0x119   : > { %v918_v35 = vpop.f32.mrb[0].mxu1 }
 0x11a   : > { %v858_v36 = vpop.f32.mrb[0].mxu0  ;;  %v1308_v37 = vpop.f32.mrb[1].mxu1  ;;  %v969_v41 = vrot.slane %v918_v35, 2 }
 0x11b   : > { %v860_v38 = vpop.f32.mrb[1].mxu0  ;;  %v921_v39 = vpop.f32.mrb[2].mxu1 }
 0x11c   : > { %v862_v40 = vpop.f32.mrb[2].mxu0  ;;  %v970_v42 = vrot.slane %v921_v39, 2  ;;  %v1309_v43 = vpop.f32.mrb[3].mxu1  ;;  %v946_v1 = vrot.slane %v860_v38, 1 }
 0x11d   : > { %v864_v45 = vpop.f32.mrb[3].mxu0 }
 0x11e   : > { %v947_v46 = vrot.slane %v864_v45, 1  ;;  %v971_v5 = vsel %vm968_vm4, %v969_v41, %v970_v42 }
 0x120   : > { %v948_v44 = vsel %vm945_vm5, %v946_v1, %v947_v46 }
 0x121   : > { %v959_v47 = vadd.f32 %v948_v44, %v858_v36  ;;  %v926_v48 = vpop.f32.mrb[4].mxu1 }
 0x122   : > { %v868_v49 = vpop.f32.mrb[4].mxu0  ;;  %v972_v52 = vrot.slane %v926_v48, 2  ;;  %v1312_v53 = vpop.f32.mrb[5].mxu1 }
 0x123   : > { %v982_v50 = vadd.f32 %v971_v5, %v959_v47  ;;  %v870_v54 = vpop.f32.mrb[5].mxu0  ;;  %v929_v56 = vpop.f32.mrb[6].mxu1 }
 0x124   : > { %v949_v55 = vrot.slane %v870_v54, 1  ;;  %v872_v57 = vpop.f32.mrb[6].mxu0  ;;  %v973_v58 = vsel %vm968_vm4, %v970_v42, %v972_v52  ;;  %v974_v59 = vrot.slane %v929_v56, 2  ;;  %v1313_v60 = vpop.f32.mrb[7].mxu1 }
 0x125   : > { %v874_v61 = vpop.f32.mrb[7].mxu0  ;;  %v993_v62 = vadd.f32 %v1206_v51, %v982_v50 }
 0x126   : > { %v950_v63 = vsel %vm945_vm5, %v947_v46, %v949_v55  ;;  %v951_v0 = vrot.slane %v874_v61, 1  ;;  %v975_v3 = vsel %vm968_vm4, %v972_v52, %v974_v59 }
 0x127   : > { %v960_v2 = vadd.f32 %v950_v63, %v862_v40  ;;  %v997_v8 = vmax.f32 %v993_v62, 0.0 }
 0x128   : > { %v952_v4 = vsel %vm945_vm5, %v949_v55, %v951_v0 }
 0x129   : > { %v983_v6 = vadd.f32 %v973_v58, %v960_v2  ;;  %v961_v7 = vadd.f32 %v952_v4, %v868_v49  ;;  %v934_v9 = vpop.f32.mrb[8].mxu1  ;;  %v1010_v24 = vmul.f32 %v997_v8, %v997_v8 }
 0x12a   : > { %v878_v10 = vpop.f32.mrb[8].mxu0  ;;  %v976_v13 = vrot.slane %v934_v9, 2  ;;  %v1316_v14 = vpop.f32.mrb[9].mxu1 }
 0x12b   : > { %v994_v11 = vadd.f32 %v1206_v51, %v983_v6  ;;  %v984_v12 = vadd.f32 %v975_v3, %v961_v7  ;;  %v879_v15 = vpop.f32.mrb[9].mxu0  ;;  %v937_v17 = vpop.f32.mrb[10].mxu1 }
 0x12c   : > { %v953_v16 = vrot.slane %v879_v15, 1  ;;  %v881_v18 = vpop.f32.mrb[10].mxu0  ;;  %v977_v21 = vsel %vm968_vm4, %v974_v59, %v976_v13  ;;  %v1317_v22 = vpop.f32.mrb[11].mxu1 }
 0x12d   : > { %v998_v19 = vmax.f32 %v994_v11, 0.0  ;;  %v995_v20 = vadd.f32 %v1206_v51, %v984_v12  ;;  %v882_v23 = vpop.f32.mrb[11].mxu0 }
 0x12e   : > { %v954_v25 = vsel %vm945_vm5, %v951_v0, %v953_v16 }
 0x12f   : > { %v1001_v26 = vadd.f32 %v998_v19, %v997_v8  ;;  %v1011_v27 = vmul.f32 %v998_v19, %v998_v19  ;;  %v1231_v28 = vpack.c.bf16 %v998_v19, %v997_v8  ;;  %v999_v29 = vmax.f32 %v995_v20, 0.0 }
 0x130   : > { %v962_v30 = vadd.f32 %v954_v25, %v872_v57 }
 0x131   : > { %v1014_v31 = vadd.f32 %v1011_v27, %v1010_v24  ;;  %1232 = vst [vmem:[%s305_s14] sm:$0xff] %v1231_v28   ;;  %v1002_v32 = vadd.f32 %v1001_v26, %v999_v29  ;;  %v1012_v33 = vmul.f32 %v999_v29, %v999_v29 }
 0x132   : > { %v985_v34 = vadd.f32 %v977_v21, %v962_v30 }
 0x133   : > { %v1015_v35 = vadd.f32 %v1014_v31, %v1012_v33 }
 0x134   : > { %v996_v36 = vadd.f32 %v1206_v51, %v985_v34 }
 0x136   : > { %v1000_v37 = vmax.f32 %v996_v36, 0.0 }
 0x138   : > { %v1003_v38 = vadd.f32 %v1002_v32, %v1000_v37  ;;  %v1013_v39 = vmul.f32 %v1000_v37, %v1000_v37  ;;  %v1236_v40 = vpack.c.bf16 %v1000_v37, %v999_v29 }
 0x13a   : > { %v1004_v41 = vrot.slane %v1003_v38, 4  ;;  %v1016_v42 = vadd.f32 %v1015_v35, %v1013_v39  ;;  %1239 = vst [vmem:[%s305_s14 + $0x8] sm:$0xff] %v1236_v40  }
 0x13c   : > { %v1005_v43 = vadd.f32 %v1004_v41, %v1003_v38  ;;  %v1017_v45 = vrot.slane %v1016_v42, 4 }
 0x13e   : > { %v1006_v1 = vrot.slane %v1005_v43, 2  ;;  %v1018_v46 = vadd.f32 %v1017_v45, %v1016_v42 }
 0x140   : > { %v1007_v5 = vadd.f32 %v1006_v1, %v1005_v43  ;;  %v1019_v44 = vrot.slane %v1018_v46, 2 }
 0x142   : > { %v1008_v47 = vrot.slane %v1007_v5, 1  ;;  %v1020_v48 = vadd.f32 %v1019_v44, %v1018_v46 }
 0x144   : > { %v1021_v49 = vrot.slane %v1020_v48, 1  ;;  %v1009_v50 = vadd.f32 %v1008_v47, %v1007_v5 }
 0x146   : > { %v1022_v51 = vadd.f32 %v1021_v49, %v1020_v48 }
 0x148   : > { %v1024_v52 = vsel %vm336_vm1, %v1009_v50, %v1022_v51 }
 0x149   : > { %1025 = vst [vmem:[%s309_s17] sm:$0x3] %v1024_v52 }
 0x14a PF: > { %s18_s24 = sadd.s32 1, %s1423_s24  }
 0x14b   : > { %p15_p4 = scmp.ge.s32.totalorder %s18_s24, 4  }
 0x14d   :  { %17 = sbr.rel (!%p15_p4) target bundleno = 1 (0x1), region = 89 }

// kernel: unet_up_block.7
= control target key start
LH: loop header
LB: loop body
LE: loop exit
PB: predicated region body
PF: predicated region fallthrough
CT: control target
= control target key end

     0   :  { %s284_s9 = smov 0   ;;  %s307_s0 = inlined_call_operand.vmem [shape: bf16[2,32,128], index: 0, kind: input, shape index: {}]   ;;  %s308_s1 = inlined_call_operand.vmem [shape: f32[2,128], index: 1, kind: input, shape index: {}]   ;;  %s309_s2 = inlined_call_operand.vmem [shape: f32[2,32,128], index: 2, kind: output, shape index: {}]  }
   0x1 LB: > { %s229_s10 = sadd.s32 4294967295, %s267_s9   ;;  %p233_p0 = scmp.ge.s32.totalorder %s267_s9, 1  ;;  %s267_s9 = sphi %s284_s9, %s12_s9  }
   0x2   : > { %p112_p1 = scmp.lt.s32.totalorder %s267_s9, 3 }
   0x4   : > { %p113_p2 = pnand %p233_p0, %p112_p1 }
   0x5   : > { %p134_p3 = scmp.lt.s32.totalorder (!%p113_p2), %s229_s10, 1  ;;  %v238_v1 = vld [vmem:[%s308_s1] ss:$0 sm:$0xff] (!%p113_p2)  ;;  %v239_v7 = vld [vmem:[%s308_s1 + $0x1] ss:$0 sm:$0xff] (!%p113_p2) }
   0x6   : > { %116 = sbr.rel (%p113_p2) target bundleno = 25 (0x19), region = 28 }
   0xd   : > { %s311_s10 = smov (!%p134_p3, %s229_s10), 1 }
   0xe   : > { %s242_s11 = sshll.u32 %s311_s10, 4  ;;  %s243_s17 = sshll.u32 %s311_s10, 5 }
   0xf   : > { %s138_s14 = scalar_lea.vmem %s307_s0, %s242_s11  ;;  %s143_s22 = scalar_lea.vmem %s309_s2, %s243_s17 }
  0x10   : > { %v245_v0 = vld [vmem:[%s138_s14] sm:$0xff]   ;;  %v252_v2 = vld [vmem:[%s138_s14 + $0x8] sm:$0xff]  }
  0x11   : > { %v246_v3 = vunpack.c.l.bf16 %v245_v0  ;;  %v247_v4 = vunpack.c.h.bf16 %v245_v0  ;;  %v250_v5 = vunpack.c.l.bf16 %v252_v2  ;;  %v251_v6 = vunpack.c.h.bf16 %v252_v2 }
  0x13   : > { %v157_v8 = vmul.f32 %v246_v3, %v238_v1  ;;  %v158_v9 = vmul.f32 %v247_v4, %v238_v1  ;;  %v159_v10 = vmul.f32 %v250_v5, %v238_v1  ;;  %v160_v11 = vmul.f32 %v251_v6, %v238_v1 }
  0x15   : > { %v166_v12 = vadd.f32 %v239_v7, %v157_v8  ;;  %v167_v13 = vadd.f32 %v239_v7, %v158_v9  ;;  %v168_v14 = vadd.f32 %v239_v7, %v159_v10  ;;  %v169_v15 = vadd.f32 %v239_v7, %v160_v11 }
  0x17   : > { %170 = vst [vmem:[%s143_s22] sm:$0xff] %v166_v12  ;;  %171 = vst [vmem:[%s143_s22 + $0x8] sm:$0xff] %v167_v13 }
  0x18   : > { %172 = vst [vmem:[%s143_s22 + $0x10] sm:$0xff] %v168_v14  ;;  %173 = vst [vmem:[%s143_s22 + $0x18] sm:$0xff] %v169_v15 }
  0x19 PF: > { %s12_s9 = sadd.s32 1, %s267_s9  }
  0x1a   : > { %p9_p4 = scmp.ge.s32.totalorder %s12_s9, 4  }
  0x1c   :  { %11 = sbr.rel (!%p9_p4) target bundleno = 1 (0x1), region = 58 }

</bundles_post_ra>
